<compile_context>
chip_gen: v7x
topology: tpu7x:2x2x1
jax: 0.10.0
libtpu: 0.0.40
codegen_flags: <defaults>
</compile_context>

<pallas_src>
import jax
import jax.numpy as jnp
from jax import lax
from jax.experimental import pallas as pl
from jax.experimental.pallas import tpu as pltpu


_NEG_INF = -1e30          # Python float -> never captured as a traced constant


def _round_up(x, m):
    return ((x + m - 1) // m) * m


def _pick_tile(mp, candidates=(256, 128, 64, 32, 16)):
    """Largest candidate dividing mp with >=2 grid steps, else one block."""
    for c in candidates:
        if c < mp and mp % c == 0:
            return c
    return mp


# ----------------------------------------------------------------------------
# Fused encoder + decoder kernel
#   rep  = GELU(frames @ W_enc + b_enc)                 (bf16 out, true D)
#   logp = log_softmax(rep @ W_dec + b_dec)             (f32 out, classes
#                                                         padded to 128 lanes,
#                                                         pads biased -1e30)
# ----------------------------------------------------------------------------
def _fused_enc_dec_kernel(f_ref, we_ref, be_ref, wd_ref, bd_ref,
                          rep_ref, lp_ref):
    x = f_ref[...].astype(jnp.bfloat16)                       # bf16 MXU operand
    h = jnp.dot(x, we_ref[...], preferred_element_type=jnp.float32) + be_ref[...]
    rep = jax.nn.gelu(h, approximate=True)
    rep_ref[...] = rep.astype(rep_ref.dtype)                  # bf16 store

    logits = jnp.dot(rep.astype(jnp.bfloat16), wd_ref[...],
                     preferred_element_type=jnp.float32) + bd_ref[...]
    m = jnp.max(logits, axis=-1, keepdims=True)
    z = logits - m
    lse = jnp.log(jnp.sum(jnp.exp(z), axis=-1, keepdims=True))
    lp_ref[...] = (z - lse).astype(lp_ref.dtype)


def _encode_decode(frames2d, w_enc, b_enc, w_dec, b_dec):
    """frames2d: (M, FRAME) -> (rep (M, D) bf16, logp (M, Cp) f32, Cp)."""
    M, K = frames2d.shape
    D = w_enc.shape[1]
    C = w_dec.shape[1]

    Cp = _round_up(C, 128)          # lane-dense decoder output (softmax axis)
    Mp = _round_up(M, 16)           # 16: bf16 sublane packing for the rep out
    tm = _pick_tile(Mp)

    # Row padding only if needed; K and D stay at their true sizes (legal:
    # block dim equal to the full array dim).
    f = frames2d if Mp == M else (
        jnp.zeros((Mp, K), frames2d.dtype).at[:M].set(frames2d))
    we = w_enc.astype(jnp.bfloat16)
    be = b_enc.reshape(1, D).astype(jnp.float32)
    wd = jnp.zeros((D, Cp), jnp.bfloat16).at[:, :C].set(
        w_dec.astype(jnp.bfloat16))
    # -inf-ish bias on padded classes keeps the fused log_softmax exact.
    bd = jnp.full((1, Cp), _NEG_INF, jnp.float32).at[:, :C].set(
        b_dec.reshape(1, C).astype(jnp.float32))

    rep_p, lp_p = pl.pallas_call(
        _fused_enc_dec_kernel,
        out_shape=(jax.ShapeDtypeStruct((Mp, D), jnp.bfloat16),
                   jax.ShapeDtypeStruct((Mp, Cp), jnp.float32)),
        grid=(Mp // tm,),
        in_specs=[
            pl.BlockSpec((tm, K), lambda i: (i, 0)),
            pl.BlockSpec((K, D), lambda i: (0, 0)),    # grid-invariant weights
            pl.BlockSpec((1, D), lambda i: (0, 0)),
            pl.BlockSpec((D, Cp), lambda i: (0, 0)),
            pl.BlockSpec((1, Cp), lambda i: (0, 0)),
        ],
        out_specs=(pl.BlockSpec((tm, D), lambda i: (i, 0)),
                   pl.BlockSpec((tm, Cp), lambda i: (i, 0))),
        compiler_params=pltpu.CompilerParams(
            dimension_semantics=("parallel",)),
    )(f, we, be, wd, bd)

    return rep_p[:M], lp_p[:M], Cp


# ----------------------------------------------------------------------------
# CTC alpha recursion: grid over T chunks ("arbitrary"), alpha carried in the
# grid-resident output block.  Extended-label axis L (padded to 128) on lanes,
# batch on sublanes.  Lane shifts via pltpu.roll; all loop invariants hoisted.
# ----------------------------------------------------------------------------
def _ctc_alpha_kernel(lp_ref, skip_ref, alpha0_ref, len_ref, out_ref):
    Tt = lp_ref.shape[0]
    B, Lp = out_ref.shape

    @pl.when(pl.program_id(0) == 0)
    def _():
        out_ref[...] = alpha0_ref[...]

    # Loop invariants (hoisted; not re-emitted per unrolled step).
    lane = lax.broadcasted_iota(jnp.int32, (B, Lp), 1)
    mask1 = lane >= 1
    mask2 = (lane >= 2) & (skip_ref[...] > 0.5)
    lens = len_ref[...]                               # (B, 1) int32
    t0 = pl.program_id(0) * Tt

    def body(lt, alpha):
        a_m1 = jnp.where(mask1, pltpu.roll(alpha, 1, 1), _NEG_INF)
        a_m2 = jnp.where(mask2, pltpu.roll(alpha, 2, 1), _NEG_INF)
        m = jnp.maximum(jnp.maximum(alpha, a_m1), a_m2)
        lse = m + jnp.log(jnp.exp(alpha - m) + jnp.exp(a_m1 - m)
                          + jnp.exp(a_m2 - m))
        t = t0 + lt
        active = (t >= 1) & (t < lens)                # t=0 folded into alpha0
        return jnp.where(active, lse + lp_ref[lt], alpha)

    out_ref[...] = lax.fori_loop(0, Tt, body, out_ref[...], unroll=8)


def _ctc_alpha_pallas(lp_tm, skip_f, alpha0, lens, chunk):
    Tp, B, Lp = lp_tm.shape
    return pl.pallas_call(
        _ctc_alpha_kernel,
        out_shape=jax.ShapeDtypeStruct((B, Lp), jnp.float32),
        grid=(Tp // chunk,),
        in_specs=[
            pl.BlockSpec((chunk, B, Lp), lambda t: (t, 0, 0)),
            pl.BlockSpec((B, Lp), lambda t: (0, 0)),
            pl.BlockSpec((B, Lp), lambda t: (0, 0)),
            pl.BlockSpec((B, 1), lambda t: (0, 0)),
        ],
        out_specs=pl.BlockSpec((B, Lp), lambda t: (0, 0)),
        compiler_params=pltpu.CompilerParams(
            dimension_semantics=("arbitrary",)),
    )(lp_tm, skip_f, alpha0, lens)


# ----------------------------------------------------------------------------
# CTC loss (matches nn.CTCLoss(blank=num_class, zero_infinity=True),
# reduction='mean' — per-sample loss divided by label length, then batch mean)
# TODO(synk): label-dependent gathers (extended-label lookup and the final
# alpha gather at 2*label_len) stay in plain JAX; the T-step alpha DP runs in
# the Pallas kernel above.
# ----------------------------------------------------------------------------
def _ctc_prepare(logp, targets, label_lengths, blank):
    # logp may carry padded class lanes; ext indices are always < num_class+1.
    B, T, _ = logp.shape
    S = targets.shape[1]
    L = 2 * S + 1

    ext = jnp.full((B, L), blank, jnp.int32).at[:, 1::2].set(
        targets.astype(jnp.int32))
    lp_ext = jnp.take_along_axis(
        logp, jnp.broadcast_to(ext[:, None, :], (B, T, L)), axis=2)

    ext_m2 = jnp.concatenate(
        [jnp.full((B, 2), -1, jnp.int32), ext[:, :-2]], axis=1)
    skip_ok = (ext != blank) & (ext != ext_m2)

    alpha0 = jnp.full((B, L), _NEG_INF, jnp.float32)
    alpha0 = alpha0.at[:, 0].set(lp_ext[:, 0, 0])
    alpha0 = alpha0.at[:, 1].set(
        jnp.where(label_lengths > 0, lp_ext[:, 0, 1], _NEG_INF))
    return lp_ext, skip_ok, alpha0


def _ctc_finalize(alpha_T, input_lengths, label_lengths):
    last = 2 * label_lengths.astype(jnp.int32)
    a_last = jnp.take_along_axis(alpha_T, last[:, None], axis=1)[:, 0]
    a_lm1 = jnp.take_along_axis(
        alpha_T, jnp.maximum(last - 1, 0)[:, None], axis=1)[:, 0]
    a_lm1 = jnp.where(label_lengths > 0, a_lm1, _NEG_INF)
    m = jnp.maximum(a_last, a_lm1)
    ll = m + jnp.log(jnp.exp(a_last - m) + jnp.exp(a_lm1 - m))
    loss_per = -ll
    loss_per = jnp.where(loss_per > 1e29, 0.0, loss_per)        # zero_infinity
    loss_per = jnp.where(input_lengths > 0, loss_per, 0.0)      # T==0 guard
    denom = jnp.maximum(label_lengths.astype(jnp.float32), 1.0)
    return jnp.mean(loss_per / denom)


def ctc_loss_mean(logp, targets, input_lengths, label_lengths, blank):
    B, T, _ = logp.shape
    lp_ext, skip_ok, alpha0 = _ctc_prepare(logp, targets, label_lengths, blank)
    L = lp_ext.shape[-1]
    Lp = _round_up(L, 128)

    # T-chunking bounds VMEM to ~2 * chunk * B * Lp * 4 bytes for lp.
    chunk = 64 if T > 64 else max(8, _round_up(T, 8) // 2)
    Tp = _round_up(T, chunk)

    lp_tm = jnp.zeros((Tp, B, Lp), jnp.float32).at[:T, :, :L].set(
        jnp.transpose(lp_ext, (1, 0, 2)))
    skip_f = jnp.zeros((B, Lp), jnp.float32).at[:, :L].set(
        skip_ok.astype(jnp.float32))
    alpha0_p = jnp.full((B, Lp), _NEG_INF, jnp.float32).at[:, :L].set(alpha0)
    lens = input_lengths.astype(jnp.int32).reshape(B, 1)

    alpha_T = _ctc_alpha_pallas(lp_tm, skip_f, alpha0_p, lens, chunk)[:, :L]
    return _ctc_finalize(alpha_T, input_lengths, label_lengths)


def _ctc_loss_mean_ref(logp, targets, input_lengths, label_lengths, blank):
    """Pure-JAX reference (lax.scan) used only for validation in __main__."""
    B, T, _ = logp.shape
    lp_ext, skip_ok, alpha0 = _ctc_prepare(logp, targets, label_lengths, blank)
    lp_tm = jnp.transpose(lp_ext, (1, 0, 2))

    def step(alpha, inputs):
        lp_t, t = inputs
        a_m1 = jnp.concatenate(
            [jnp.full((B, 1), _NEG_INF, jnp.float32), alpha[:, :-1]], axis=1)
        a_m2 = jnp.concatenate(
            [jnp.full((B, 2), _NEG_INF, jnp.float32), alpha[:, :-2]], axis=1)
        a_m2 = jnp.where(skip_ok, a_m2, _NEG_INF)
        m = jnp.maximum(jnp.maximum(alpha, a_m1), a_m2)
        lse = m + jnp.log(jnp.exp(alpha - m) + jnp.exp(a_m1 - m)
                          + jnp.exp(a_m2 - m))
        new_alpha = jnp.where((t < input_lengths)[:, None], lse + lp_t, alpha)
        return new_alpha, None

    alpha_T, _ = lax.scan(step, alpha0, (lp_tm[1:], jnp.arange(1, T)))
    return _ctc_finalize(alpha_T, input_lengths, label_lengths)


# ----------------------------------------------------------------------------
# Module forward (mirrors SSLDATASR.forward)
# ----------------------------------------------------------------------------
def ssl_datasr_forward(params, x, target, input_lengths, label_lengths):
    B, Lw = x.shape
    FRAME, D = params["w_enc"].shape
    C = params["w_dec"].shape[1]
    T = Lw // FRAME

    # "encoder.extract_features" stand-in + "decoder_phn" + log_softmax, fused.
    frames = x[:, :T * FRAME].reshape(B * T, FRAME)
    rep2d, logp2d, _ = _encode_decode(frames, params["w_enc"], params["b_enc"],
                                      params["w_dec"], params["b_dec"])
    rep = rep2d.reshape(B, T, D)
    logp_pad = logp2d.reshape(B, T, -1)   # (B, T, Cp); padded classes ~ -1e30

    blank = C - 1  # blank = num_class
    ctc = ctc_loss_mean(logp_pad, target, input_lengths, label_lengths, blank)
    return (ctc, {"CTCLoss": lax.stop_gradient(ctc)}), rep


def ssl_datasr_inference(params, x):
    # Returns log-probs (log_softmax is a monotone shift of the decoder
    # logits, so argmax decoding is unchanged) plus the encoder representation.
    B, Lw = x.shape
    FRAME, D = params["w_enc"].shape
    C = params["w_dec"].shape[1]
    T = Lw // FRAME
    frames = x[:, :T * FRAME].reshape(B * T, FRAME)
    rep2d, logp2d, _ = _encode_decode(frames, params["w_enc"], params["b_enc"],
                                      params["w_dec"], params["b_dec"])
    return logp2d[:, :C].reshape(B, T, C), rep2d.reshape(B, T, D)


# ----------------------------------------------------------------------------
if __name__ == "__main__":
    key = jax.random.PRNGKey(0)
    B, L_WAVE, FRAME = 2, 1024, 64
    D_ENC, NUM_CLASS = 32, 10
    C = NUM_CLASS + 1
    T = L_WAVE // FRAME            # 16 frames
    S = 6                          # max label length

    k1, k2, k3, k4 = jax.random.split(key, 4)
    params = {
        "w_enc": 0.05 * jax.random.normal(k1, (FRAME, D_ENC), jnp.float32),
        "b_enc": jnp.zeros((1, D_ENC), jnp.float32),
        "w_dec": 0.05 * jax.random.normal(k2, (D_ENC, C), jnp.float32),
        "b_dec": jnp.zeros((1, C), jnp.float32),
    }

    x = jax.random.normal(k3, (B, L_WAVE), jnp.float32)
    target = jax.random.randint(k4, (B, S), 0, NUM_CLASS, dtype=jnp.int32)
    input_lengths = jnp.array([T, T - 4], jnp.int32)
    label_lengths = jnp.array([S, S - 2], jnp.int32)

    fwd = jax.jit(ssl_datasr_forward)
    (loss, stats), rep = fwd(params, x, target, input_lengths, label_lengths)
    jax.block_until_ready((loss, stats["CTCLoss"], rep))

    assert rep.shape == (B, T, D_ENC)
    assert loss.shape == ()
    assert bool(jnp.isfinite(loss))

    # Validate the Pallas CTC DP against the pure-JAX scan reference on the
    # exact same log-probs produced by the fused encoder/decoder kernel.
    logp, _ = ssl_datasr_inference(params, x)
    loss_ref = _ctc_loss_mean_ref(logp, target, input_lengths, label_lengths,
                                  C - 1)
    assert bool(jnp.allclose(loss, loss_ref, rtol=1e-3, atol=1e-3))

    print("KERNEL_OK")
</pallas_src>

<mosaic_0001>
module attributes {stable_mosaic.version = 11 : i64} {
  func.func @_fused_enc_dec_kernel(%arg0: i32, %arg1: memref<16x64xf32, #tpu.memory_space<vmem>>, %arg2: memref<64x32xbf16, #tpu.memory_space<vmem>>, %arg3: memref<1x32xf32, #tpu.memory_space<vmem>>, %arg4: memref<32x128xbf16, #tpu.memory_space<vmem>>, %arg5: memref<1x128xf32, #tpu.memory_space<vmem>>, %arg6: memref<16x32xbf16, #tpu.memory_space<vmem>>, %arg7: memref<16x128xf32, #tpu.memory_space<vmem>>) attributes {dimension_semantics = [#tpu.dimension_semantics<parallel>], iteration_bounds = array<i64: 2>, scalar_prefetch = 0 : i64, scratch_operands = 0 : i64, tpu.core_type = #tpu.core_type<tc>, window_params = [{transform_indices = @transform_0, window_bounds = array<i64: 16, 64>}, {pipeline_mode = #tpu.pipeline_mode<synchronous>, transform_indices = @transform_1, window_bounds = array<i64: 64, 32>}, {pipeline_mode = #tpu.pipeline_mode<synchronous>, transform_indices = @transform_2, window_bounds = array<i64: 1, 32>}, {pipeline_mode = #tpu.pipeline_mode<synchronous>, transform_indices = @transform_3, window_bounds = array<i64: 32, 128>}, {pipeline_mode = #tpu.pipeline_mode<synchronous>, transform_indices = @transform_4, window_bounds = array<i64: 1, 128>}, {transform_indices = @transform_5, window_bounds = array<i64: 16, 32>}, {transform_indices = @transform_6, window_bounds = array<i64: 16, 128>}]} {
    %c0 = arith.constant 0 : index
    %c0_0 = arith.constant 0 : index
    %0 = vector.load %arg1[%c0, %c0_0] : memref<16x64xf32, #tpu.memory_space<vmem>>, vector<16x64xf32>
    %1 = arith.truncf %0 : vector<16x64xf32> to vector<16x64xbf16>
    %c0_1 = arith.constant 0 : index
    %c0_2 = arith.constant 0 : index
    %2 = vector.load %arg2[%c0_1, %c0_2] : memref<64x32xbf16, #tpu.memory_space<vmem>>, vector<64x32xbf16>
    %cst = arith.constant dense<0.000000e+00> : vector<16x32xf32>
    %3 = tpu.matmul %1, %2, %cst {dimension_numbers = #tpu.dot_dimension_numbers<[1], [0], [0], [1], [0, 0, 1, 1], [], []>} : vector<16x64xbf16>, vector<64x32xbf16>, vector<16x32xf32> -> vector<16x32xf32>
    %c0_3 = arith.constant 0 : index
    %c0_4 = arith.constant 0 : index
    %4 = vector.load %arg3[%c0_3, %c0_4] : memref<1x32xf32, #tpu.memory_space<vmem>>, vector<1x32xf32>
    %5 = vector.broadcast %4 : vector<1x32xf32> to vector<16x32xf32>
    %6 = arith.addf %3, %5 : vector<16x32xf32>
    %7 = arith.mulf %6, %6 : vector<16x32xf32>
    %8 = arith.mulf %6, %7 : vector<16x32xf32>
    %cst_5 = arith.constant 4.471500e-02 : f32
    %9 = vector.broadcast %cst_5 : f32 to vector<16x32xf32>
    %10 = arith.mulf %9, %8 : vector<16x32xf32>
    %11 = arith.addf %6, %10 : vector<16x32xf32>
    %cst_6 = arith.constant 0.797884583 : f32
    %12 = vector.broadcast %cst_6 : f32 to vector<16x32xf32>
    %13 = arith.mulf %12, %11 : vector<16x32xf32>
    %14 = math.tanh %13 : vector<16x32xf32>
    %cst_7 = arith.constant 1.000000e+00 : f32
    %15 = vector.broadcast %cst_7 : f32 to vector<16x32xf32>
    %16 = arith.addf %15, %14 : vector<16x32xf32>
    %cst_8 = arith.constant 5.000000e-01 : f32
    %17 = vector.broadcast %cst_8 : f32 to vector<16x32xf32>
    %18 = arith.mulf %17, %16 : vector<16x32xf32>
    %19 = arith.mulf %6, %18 : vector<16x32xf32>
    %20 = arith.truncf %19 : vector<16x32xf32> to vector<16x32xbf16>
    %c0_9 = arith.constant 0 : index
    %c0_10 = arith.constant 0 : index
    %21 = vector.load %arg6[%c0_9, %c0_10] : memref<16x32xbf16, #tpu.memory_space<vmem>>, vector<16x32xbf16>
    tpu.vector_store %arg6[%c0_9, %c0_10], %20 {strides = array<i32>} : memref<16x32xbf16, #tpu.memory_space<vmem>>, vector<16x32xbf16>,
    %22 = arith.truncf %19 : vector<16x32xf32> to vector<16x32xbf16>
    %c0_11 = arith.constant 0 : index
    %c0_12 = arith.constant 0 : index
    %23 = vector.load %arg4[%c0_11, %c0_12] : memref<32x128xbf16, #tpu.memory_space<vmem>>, vector<32x128xbf16>
    %cst_13 = arith.constant dense<0.000000e+00> : vector<16x128xf32>
    %24 = tpu.matmul %22, %23, %cst_13 {dimension_numbers = #tpu.dot_dimension_numbers<[1], [0], [0], [1], [0, 0, 1, 1], [], []>} : vector<16x32xbf16>, vector<32x128xbf16>, vector<16x128xf32> -> vector<16x128xf32>
    %c0_14 = arith.constant 0 : index
    %c0_15 = arith.constant 0 : index
    %25 = vector.load %arg5[%c0_14, %c0_15] : memref<1x128xf32, #tpu.memory_space<vmem>>, vector<1x128xf32>
    %26 = vector.broadcast %25 : vector<1x128xf32> to vector<16x128xf32>
    %27 = arith.addf %24, %26 : vector<16x128xf32>
    %cst_16 = arith.constant dense<0xFF800000> : vector<16xf32>
    %28 = vector.multi_reduction <maximumf>, %27, %cst_16 [1] : vector<16x128xf32> to vector<16xf32>
    %29 = vector.shape_cast %28 : vector<16xf32> to vector<16x1xf32>
    %30 = vector.broadcast %29 : vector<16x1xf32> to vector<16x128xf32>
    %31 = arith.subf %27, %30 : vector<16x128xf32>
    %32 = math.exp %31 : vector<16x128xf32>
    %cst_17 = arith.constant dense<0.000000e+00> : vector<16xf32>
    %33 = vector.multi_reduction <add>, %32, %cst_17 [1] : vector<16x128xf32> to vector<16xf32>
    %34 = vector.shape_cast %33 : vector<16xf32> to vector<16x1xf32>
    %35 = math.log %34 : vector<16x1xf32>
    %36 = vector.broadcast %35 : vector<16x1xf32> to vector<16x128xf32>
    %37 = arith.subf %31, %36 : vector<16x128xf32>
    %c0_18 = arith.constant 0 : index
    %c0_19 = arith.constant 0 : index
    %38 = vector.load %arg7[%c0_18, %c0_19] : memref<16x128xf32, #tpu.memory_space<vmem>>, vector<16x128xf32>
    tpu.vector_store %arg7[%c0_18, %c0_19], %37 {strides = array<i32>} : memref<16x128xf32, #tpu.memory_space<vmem>>, vector<16x128xf32>,
    return
  }
  func.func @transform_0(%arg0: i32) -> (i32, i32) {
    %c0_i32 = arith.constant 0 : i32
    %c0_i32_0 = arith.constant 0 : i32
    return %arg0, %c0_i32 : i32, i32
  }
  func.func @transform_1(%arg0: i32) -> (i32, i32) {
    %c0_i32 = arith.constant 0 : i32
    %c0_i32_0 = arith.constant 0 : i32
    %c0_i32_1 = arith.constant 0 : i32
    return %c0_i32, %c0_i32_0 : i32, i32
  }
  func.func @transform_2(%arg0: i32) -> (i32, i32) {
    %c0_i32 = arith.constant 0 : i32
    %c0_i32_0 = arith.constant 0 : i32
    %c0_i32_1 = arith.constant 0 : i32
    return %c0_i32, %c0_i32_0 : i32, i32
  }
  func.func @transform_3(%arg0: i32) -> (i32, i32) {
    %c0_i32 = arith.constant 0 : i32
    %c0_i32_0 = arith.constant 0 : i32
    %c0_i32_1 = arith.constant 0 : i32
    return %c0_i32, %c0_i32_0 : i32, i32
  }
  func.func @transform_4(%arg0: i32) -> (i32, i32) {
    %c0_i32 = arith.constant 0 : i32
    %c0_i32_0 = arith.constant 0 : i32
    %c0_i32_1 = arith.constant 0 : i32
    return %c0_i32, %c0_i32_0 : i32, i32
  }
  func.func @transform_5(%arg0: i32) -> (i32, i32) {
    %c0_i32 = arith.constant 0 : i32
    %c0_i32_0 = arith.constant 0 : i32
    return %arg0, %c0_i32 : i32, i32
  }
  func.func @transform_6(%arg0: i32) -> (i32, i32) {
    %c0_i32 = arith.constant 0 : i32
    %c0_i32_0 = arith.constant 0 : i32
    return %arg0, %c0_i32 : i32, i32
  }
}

module attributes {stable_mosaic.version = 11 : i64} {
  func.func @_ctc_alpha_kernel(%arg0: i32, %arg1: memref<8x2x128xf32, #tpu.memory_space<vmem>>, %arg2: memref<2x128xf32, #tpu.memory_space<vmem>>, %arg3: memref<2x128xf32, #tpu.memory_space<vmem>>, %arg4: memref<2x1xi32, #tpu.memory_space<vmem>>, %arg5: memref<2x128xf32, #tpu.memory_space<vmem>>) attributes {dimension_semantics = [#tpu.dimension_semantics<arbitrary>], iteration_bounds = array<i64: 2>, scalar_prefetch = 0 : i64, scratch_operands = 0 : i64, tpu.core_type = #tpu.core_type<tc>, window_params = [{transform_indices = @transform_0, window_bounds = array<i64: 8, 2, 128>}, {pipeline_mode = #tpu.pipeline_mode<synchronous>, transform_indices = @transform_1, window_bounds = array<i64: 2, 128>}, {pipeline_mode = #tpu.pipeline_mode<synchronous>, transform_indices = @transform_2, window_bounds = array<i64: 2, 128>}, {pipeline_mode = #tpu.pipeline_mode<synchronous>, transform_indices = @transform_3, window_bounds = array<i64: 2, 1>}, {pipeline_mode = #tpu.pipeline_mode<synchronous>, transform_indices = @transform_4, window_bounds = array<i64: 2, 128>}]} {
    %c0_i32 = arith.constant 0 : i32
    %0 = arith.cmpi eq, %arg0, %c0_i32 : i32
    %1 = arith.extui %0 : i1 to i32
    %c0_i32_0 = arith.constant 0 : i32
    %2 = arith.cmpi ne, %1, %c0_i32_0 : i32
    scf.if %2 {
      %c0_68 = arith.constant 0 : index
      %c0_69 = arith.constant 0 : index
      %264 = vector.load %arg3[%c0_68, %c0_69] : memref<2x128xf32, #tpu.memory_space<vmem>>, vector<2x128xf32>
      %c0_70 = arith.constant 0 : index
      %c0_71 = arith.constant 0 : index
      %265 = vector.load %arg5[%c0_70, %c0_71] : memref<2x128xf32, #tpu.memory_space<vmem>>, vector<2x128xf32>
      tpu.vector_store %arg5[%c0_70, %c0_71], %264 {strides = array<i32>} : memref<2x128xf32, #tpu.memory_space<vmem>>, vector<2x128xf32>,
    } else {
    }
    %3 = tpu.iota {dimensions = array<i32: 1>} : vector<2x128xi32>
    %c1_i32 = arith.constant 1 : i32
    %4 = vector.broadcast %c1_i32 : i32 to vector<2x128xi32>
    %5 = arith.cmpi sge, %3, %4 : vector<2x128xi32>
    %c2_i32 = arith.constant 2 : i32
    %6 = vector.broadcast %c2_i32 : i32 to vector<2x128xi32>
    %7 = arith.cmpi sge, %3, %6 : vector<2x128xi32>
    %c0 = arith.constant 0 : index
    %c0_1 = arith.constant 0 : index
    %8 = vector.load %arg2[%c0, %c0_1] : memref<2x128xf32, #tpu.memory_space<vmem>>, vector<2x128xf32>
    %cst = arith.constant 5.000000e-01 : f32
    %9 = vector.broadcast %cst : f32 to vector<2x128xf32>
    %10 = arith.cmpf ogt, %8, %9 : vector<2x128xf32>
    %11 = arith.andi %7, %10 : vector<2x128xi1>
    %c0_2 = arith.constant 0 : index
    %c0_3 = arith.constant 0 : index
    %12 = vector.load %arg4[%c0_2, %c0_3] : memref<2x1xi32, #tpu.memory_space<vmem>>, vector<2x1xi32>
    %c8_i32 = arith.constant 8 : i32
    %13 = arith.muli %arg0, %c8_i32 : i32
    %c0_4 = arith.constant 0 : index
    %c0_5 = arith.constant 0 : index
    %14 = vector.load %arg5[%c0_4, %c0_5] : memref<2x128xf32, #tpu.memory_space<vmem>>, vector<2x128xf32>
    %c0_i32_6 = arith.constant 0 : i32
    %c1_i32_7 = arith.constant 1 : i32
    %15 = tpu.dynamic_rotate %14 by %c1_i32_7 dim 1 : vector<2x128xf32>, i32 -> vector<2x128xf32>
    %cst_8 = arith.constant -1.000000e+30 : f32
    %16 = vector.broadcast %cst_8 : f32 to vector<2x128xf32>
    %17 = arith.select %5, %15, %16 : vector<2x128xi1>, vector<2x128xf32>
    %c2_i32_9 = arith.constant 2 : i32
    %18 = tpu.dynamic_rotate %14 by %c2_i32_9 dim 1 : vector<2x128xf32>, i32 -> vector<2x128xf32>
    %cst_10 = arith.constant -1.000000e+30 : f32
    %19 = vector.broadcast %cst_10 : f32 to vector<2x128xf32>
    %20 = arith.select %11, %18, %19 : vector<2x128xi1>, vector<2x128xf32>
    %21 = arith.maximumf %14, %17 : vector<2x128xf32>
    %22 = arith.maximumf %21, %20 : vector<2x128xf32>
    %23 = arith.subf %14, %22 : vector<2x128xf32>
    %24 = math.exp %23 : vector<2x128xf32>
    %25 = arith.subf %17, %22 : vector<2x128xf32>
    %26 = math.exp %25 : vector<2x128xf32>
    %27 = arith.addf %24, %26 : vector<2x128xf32>
    %28 = arith.subf %20, %22 : vector<2x128xf32>
    %29 = math.exp %28 : vector<2x128xf32>
    %30 = arith.addf %27, %29 : vector<2x128xf32>
    %31 = math.log %30 : vector<2x128xf32>
    %32 = arith.addf %22, %31 : vector<2x128xf32>
    %33 = arith.addi %13, %c0_i32_6 : i32
    %c1_i32_11 = arith.constant 1 : i32
    %34 = arith.cmpi sge, %33, %c1_i32_11 : i32
    %35 = vector.broadcast %33 : i32 to vector<2x1xi32>
    %36 = arith.cmpi slt, %35, %12 : vector<2x1xi32>
    %37 = vector.broadcast %34 : i1 to vector<2x1xi1>
    %38 = arith.andi %37, %36 : vector<2x1xi1>
    %39 = arith.index_cast %c0_i32_6 : i32 to index
    %c0_12 = arith.constant 0 : index
    %c0_13 = arith.constant 0 : index
    %40 = vector.load %arg1[%39, %c0_12, %c0_13] : memref<8x2x128xf32, #tpu.memory_space<vmem>>, vector<1x2x128xf32>
    %41 = vector.shape_cast %40 : vector<1x2x128xf32> to vector<2x128xf32>
    %42 = arith.addf %32, %41 : vector<2x128xf32>
    %43 = vector.shape_cast %38 : vector<2x1xi1> to vector<2x1xi1>
    %44 = vector.broadcast %43 : vector<2x1xi1> to vector<2x128xi1>
    %45 = arith.select %44, %42, %14 : vector<2x128xi1>, vector<2x128xf32>
    %c1_i32_14 = arith.constant 1 : i32
    %c1_i32_15 = arith.constant 1 : i32
    %46 = tpu.dynamic_rotate %45 by %c1_i32_15 dim 1 : vector<2x128xf32>, i32 -> vector<2x128xf32>
    %cst_16 = arith.constant -1.000000e+30 : f32
    %47 = vector.broadcast %cst_16 : f32 to vector<2x128xf32>
    %48 = arith.select %5, %46, %47 : vector<2x128xi1>, vector<2x128xf32>
    %c2_i32_17 = arith.constant 2 : i32
    %49 = tpu.dynamic_rotate %45 by %c2_i32_17 dim 1 : vector<2x128xf32>, i32 -> vector<2x128xf32>
    %cst_18 = arith.constant -1.000000e+30 : f32
    %50 = vector.broadcast %cst_18 : f32 to vector<2x128xf32>
    %51 = arith.select %11, %49, %50 : vector<2x128xi1>, vector<2x128xf32>
    %52 = arith.maximumf %45, %48 : vector<2x128xf32>
    %53 = arith.maximumf %52, %51 : vector<2x128xf32>
    %54 = arith.subf %45, %53 : vector<2x128xf32>
    %55 = math.exp %54 : vector<2x128xf32>
    %56 = arith.subf %48, %53 : vector<2x128xf32>
    %57 = math.exp %56 : vector<2x128xf32>
    %58 = arith.addf %55, %57 : vector<2x128xf32>
    %59 = arith.subf %51, %53 : vector<2x128xf32>
    %60 = math.exp %59 : vector<2x128xf32>
    %61 = arith.addf %58, %60 : vector<2x128xf32>
    %62 = math.log %61 : vector<2x128xf32>
    %63 = arith.addf %53, %62 : vector<2x128xf32>
    %64 = arith.addi %13, %c1_i32_14 : i32
    %c1_i32_19 = arith.constant 1 : i32
    %65 = arith.cmpi sge, %64, %c1_i32_19 : i32
    %66 = vector.broadcast %64 : i32 to vector<2x1xi32>
    %67 = arith.cmpi slt, %66, %12 : vector<2x1xi32>
    %68 = vector.broadcast %65 : i1 to vector<2x1xi1>
    %69 = arith.andi %68, %67 : vector<2x1xi1>
    %70 = arith.index_cast %c1_i32_14 : i32 to index
    %c0_20 = arith.constant 0 : index
    %c0_21 = arith.constant 0 : index
    %71 = vector.load %arg1[%70, %c0_20, %c0_21] : memref<8x2x128xf32, #tpu.memory_space<vmem>>, vector<1x2x128xf32>
    %72 = vector.shape_cast %71 : vector<1x2x128xf32> to vector<2x128xf32>
    %73 = arith.addf %63, %72 : vector<2x128xf32>
    %74 = vector.shape_cast %69 : vector<2x1xi1> to vector<2x1xi1>
    %75 = vector.broadcast %74 : vector<2x1xi1> to vector<2x128xi1>
    %76 = arith.select %75, %73, %45 : vector<2x128xi1>, vector<2x128xf32>
    %c2_i32_22 = arith.constant 2 : i32
    %c1_i32_23 = arith.constant 1 : i32
    %77 = tpu.dynamic_rotate %76 by %c1_i32_23 dim 1 : vector<2x128xf32>, i32 -> vector<2x128xf32>
    %cst_24 = arith.constant -1.000000e+30 : f32
    %78 = vector.broadcast %cst_24 : f32 to vector<2x128xf32>
    %79 = arith.select %5, %77, %78 : vector<2x128xi1>, vector<2x128xf32>
    %c2_i32_25 = arith.constant 2 : i32
    %80 = tpu.dynamic_rotate %76 by %c2_i32_25 dim 1 : vector<2x128xf32>, i32 -> vector<2x128xf32>
    %cst_26 = arith.constant -1.000000e+30 : f32
    %81 = vector.broadcast %cst_26 : f32 to vector<2x128xf32>
    %82 = arith.select %11, %80, %81 : vector<2x128xi1>, vector<2x128xf32>
    %83 = arith.maximumf %76, %79 : vector<2x128xf32>
    %84 = arith.maximumf %83, %82 : vector<2x128xf32>
    %85 = arith.subf %76, %84 : vector<2x128xf32>
    %86 = math.exp %85 : vector<2x128xf32>
    %87 = arith.subf %79, %84 : vector<2x128xf32>
    %88 = math.exp %87 : vector<2x128xf32>
    %89 = arith.addf %86, %88 : vector<2x128xf32>
    %90 = arith.subf %82, %84 : vector<2x128xf32>
    %91 = math.exp %90 : vector<2x128xf32>
    %92 = arith.addf %89, %91 : vector<2x128xf32>
    %93 = math.log %92 : vector<2x128xf32>
    %94 = arith.addf %84, %93 : vector<2x128xf32>
    %95 = arith.addi %13, %c2_i32_22 : i32
    %c1_i32_27 = arith.constant 1 : i32
    %96 = arith.cmpi sge, %95, %c1_i32_27 : i32
    %97 = vector.broadcast %95 : i32 to vector<2x1xi32>
    %98 = arith.cmpi slt, %97, %12 : vector<2x1xi32>
    %99 = vector.broadcast %96 : i1 to vector<2x1xi1>
    %100 = arith.andi %99, %98 : vector<2x1xi1>
    %101 = arith.index_cast %c2_i32_22 : i32 to index
    %c0_28 = arith.constant 0 : index
    %c0_29 = arith.constant 0 : index
    %102 = vector.load %arg1[%101, %c0_28, %c0_29] : memref<8x2x128xf32, #tpu.memory_space<vmem>>, vector<1x2x128xf32>
    %103 = vector.shape_cast %102 : vector<1x2x128xf32> to vector<2x128xf32>
    %104 = arith.addf %94, %103 : vector<2x128xf32>
    %105 = vector.shape_cast %100 : vector<2x1xi1> to vector<2x1xi1>
    %106 = vector.broadcast %105 : vector<2x1xi1> to vector<2x128xi1>
    %107 = arith.select %106, %104, %76 : vector<2x128xi1>, vector<2x128xf32>
    %c3_i32 = arith.constant 3 : i32
    %c1_i32_30 = arith.constant 1 : i32
    %108 = tpu.dynamic_rotate %107 by %c1_i32_30 dim 1 : vector<2x128xf32>, i32 -> vector<2x128xf32>
    %cst_31 = arith.constant -1.000000e+30 : f32
    %109 = vector.broadcast %cst_31 : f32 to vector<2x128xf32>
    %110 = arith.select %5, %108, %109 : vector<2x128xi1>, vector<2x128xf32>
    %c2_i32_32 = arith.constant 2 : i32
    %111 = tpu.dynamic_rotate %107 by %c2_i32_32 dim 1 : vector<2x128xf32>, i32 -> vector<2x128xf32>
    %cst_33 = arith.constant -1.000000e+30 : f32
    %112 = vector.broadcast %cst_33 : f32 to vector<2x128xf32>
    %113 = arith.select %11, %111, %112 : vector<2x128xi1>, vector<2x128xf32>
    %114 = arith.maximumf %107, %110 : vector<2x128xf32>
    %115 = arith.maximumf %114, %113 : vector<2x128xf32>
    %116 = arith.subf %107, %115 : vector<2x128xf32>
    %117 = math.exp %116 : vector<2x128xf32>
    %118 = arith.subf %110, %115 : vector<2x128xf32>
    %119 = math.exp %118 : vector<2x128xf32>
    %120 = arith.addf %117, %119 : vector<2x128xf32>
    %121 = arith.subf %113, %115 : vector<2x128xf32>
    %122 = math.exp %121 : vector<2x128xf32>
    %123 = arith.addf %120, %122 : vector<2x128xf32>
    %124 = math.log %123 : vector<2x128xf32>
    %125 = arith.addf %115, %124 : vector<2x128xf32>
    %126 = arith.addi %13, %c3_i32 : i32
    %c1_i32_34 = arith.constant 1 : i32
    %127 = arith.cmpi sge, %126, %c1_i32_34 : i32
    %128 = vector.broadcast %126 : i32 to vector<2x1xi32>
    %129 = arith.cmpi slt, %128, %12 : vector<2x1xi32>
    %130 = vector.broadcast %127 : i1 to vector<2x1xi1>
    %131 = arith.andi %130, %129 : vector<2x1xi1>
    %132 = arith.index_cast %c3_i32 : i32 to index
    %c0_35 = arith.constant 0 : index
    %c0_36 = arith.constant 0 : index
    %133 = vector.load %arg1[%132, %c0_35, %c0_36] : memref<8x2x128xf32, #tpu.memory_space<vmem>>, vector<1x2x128xf32>
    %134 = vector.shape_cast %133 : vector<1x2x128xf32> to vector<2x128xf32>
    %135 = arith.addf %125, %134 : vector<2x128xf32>
    %136 = vector.shape_cast %131 : vector<2x1xi1> to vector<2x1xi1>
    %137 = vector.broadcast %136 : vector<2x1xi1> to vector<2x128xi1>
    %138 = arith.select %137, %135, %107 : vector<2x128xi1>, vector<2x128xf32>
    %c4_i32 = arith.constant 4 : i32
    %c1_i32_37 = arith.constant 1 : i32
    %139 = tpu.dynamic_rotate %138 by %c1_i32_37 dim 1 : vector<2x128xf32>, i32 -> vector<2x128xf32>
    %cst_38 = arith.constant -1.000000e+30 : f32
    %140 = vector.broadcast %cst_38 : f32 to vector<2x128xf32>
    %141 = arith.select %5, %139, %140 : vector<2x128xi1>, vector<2x128xf32>
    %c2_i32_39 = arith.constant 2 : i32
    %142 = tpu.dynamic_rotate %138 by %c2_i32_39 dim 1 : vector<2x128xf32>, i32 -> vector<2x128xf32>
    %cst_40 = arith.constant -1.000000e+30 : f32
    %143 = vector.broadcast %cst_40 : f32 to vector<2x128xf32>
    %144 = arith.select %11, %142, %143 : vector<2x128xi1>, vector<2x128xf32>
    %145 = arith.maximumf %138, %141 : vector<2x128xf32>
    %146 = arith.maximumf %145, %144 : vector<2x128xf32>
    %147 = arith.subf %138, %146 : vector<2x128xf32>
    %148 = math.exp %147 : vector<2x128xf32>
    %149 = arith.subf %141, %146 : vector<2x128xf32>
    %150 = math.exp %149 : vector<2x128xf32>
    %151 = arith.addf %148, %150 : vector<2x128xf32>
    %152 = arith.subf %144, %146 : vector<2x128xf32>
    %153 = math.exp %152 : vector<2x128xf32>
    %154 = arith.addf %151, %153 : vector<2x128xf32>
    %155 = math.log %154 : vector<2x128xf32>
    %156 = arith.addf %146, %155 : vector<2x128xf32>
    %157 = arith.addi %13, %c4_i32 : i32
    %c1_i32_41 = arith.constant 1 : i32
    %158 = arith.cmpi sge, %157, %c1_i32_41 : i32
    %159 = vector.broadcast %157 : i32 to vector<2x1xi32>
    %160 = arith.cmpi slt, %159, %12 : vector<2x1xi32>
    %161 = vector.broadcast %158 : i1 to vector<2x1xi1>
    %162 = arith.andi %161, %160 : vector<2x1xi1>
    %163 = arith.index_cast %c4_i32 : i32 to index
    %c0_42 = arith.constant 0 : index
    %c0_43 = arith.constant 0 : index
    %164 = vector.load %arg1[%163, %c0_42, %c0_43] : memref<8x2x128xf32, #tpu.memory_space<vmem>>, vector<1x2x128xf32>
    %165 = vector.shape_cast %164 : vector<1x2x128xf32> to vector<2x128xf32>
    %166 = arith.addf %156, %165 : vector<2x128xf32>
    %167 = vector.shape_cast %162 : vector<2x1xi1> to vector<2x1xi1>
    %168 = vector.broadcast %167 : vector<2x1xi1> to vector<2x128xi1>
    %169 = arith.select %168, %166, %138 : vector<2x128xi1>, vector<2x128xf32>
    %c5_i32 = arith.constant 5 : i32
    %c1_i32_44 = arith.constant 1 : i32
    %170 = tpu.dynamic_rotate %169 by %c1_i32_44 dim 1 : vector<2x128xf32>, i32 -> vector<2x128xf32>
    %cst_45 = arith.constant -1.000000e+30 : f32
    %171 = vector.broadcast %cst_45 : f32 to vector<2x128xf32>
    %172 = arith.select %5, %170, %171 : vector<2x128xi1>, vector<2x128xf32>
    %c2_i32_46 = arith.constant 2 : i32
    %173 = tpu.dynamic_rotate %169 by %c2_i32_46 dim 1 : vector<2x128xf32>, i32 -> vector<2x128xf32>
    %cst_47 = arith.constant -1.000000e+30 : f32
    %174 = vector.broadcast %cst_47 : f32 to vector<2x128xf32>
    %175 = arith.select %11, %173, %174 : vector<2x128xi1>, vector<2x128xf32>
    %176 = arith.maximumf %169, %172 : vector<2x128xf32>
    %177 = arith.maximumf %176, %175 : vector<2x128xf32>
    %178 = arith.subf %169, %177 : vector<2x128xf32>
    %179 = math.exp %178 : vector<2x128xf32>
    %180 = arith.subf %172, %177 : vector<2x128xf32>
    %181 = math.exp %180 : vector<2x128xf32>
    %182 = arith.addf %179, %181 : vector<2x128xf32>
    %183 = arith.subf %175, %177 : vector<2x128xf32>
    %184 = math.exp %183 : vector<2x128xf32>
    %185 = arith.addf %182, %184 : vector<2x128xf32>
    %186 = math.log %185 : vector<2x128xf32>
    %187 = arith.addf %177, %186 : vector<2x128xf32>
    %188 = arith.addi %13, %c5_i32 : i32
    %c1_i32_48 = arith.constant 1 : i32
    %189 = arith.cmpi sge, %188, %c1_i32_48 : i32
    %190 = vector.broadcast %188 : i32 to vector<2x1xi32>
    %191 = arith.cmpi slt, %190, %12 : vector<2x1xi32>
    %192 = vector.broadcast %189 : i1 to vector<2x1xi1>
    %193 = arith.andi %192, %191 : vector<2x1xi1>
    %194 = arith.index_cast %c5_i32 : i32 to index
    %c0_49 = arith.constant 0 : index
    %c0_50 = arith.constant 0 : index
    %195 = vector.load %arg1[%194, %c0_49, %c0_50] : memref<8x2x128xf32, #tpu.memory_space<vmem>>, vector<1x2x128xf32>
    %196 = vector.shape_cast %195 : vector<1x2x128xf32> to vector<2x128xf32>
    %197 = arith.addf %187, %196 : vector<2x128xf32>
    %198 = vector.shape_cast %193 : vector<2x1xi1> to vector<2x1xi1>
    %199 = vector.broadcast %198 : vector<2x1xi1> to vector<2x128xi1>
    %200 = arith.select %199, %197, %169 : vector<2x128xi1>, vector<2x128xf32>
    %c6_i32 = arith.constant 6 : i32
    %c1_i32_51 = arith.constant 1 : i32
    %201 = tpu.dynamic_rotate %200 by %c1_i32_51 dim 1 : vector<2x128xf32>, i32 -> vector<2x128xf32>
    %cst_52 = arith.constant -1.000000e+30 : f32
    %202 = vector.broadcast %cst_52 : f32 to vector<2x128xf32>
    %203 = arith.select %5, %201, %202 : vector<2x128xi1>, vector<2x128xf32>
    %c2_i32_53 = arith.constant 2 : i32
    %204 = tpu.dynamic_rotate %200 by %c2_i32_53 dim 1 : vector<2x128xf32>, i32 -> vector<2x128xf32>
    %cst_54 = arith.constant -1.000000e+30 : f32
    %205 = vector.broadcast %cst_54 : f32 to vector<2x128xf32>
    %206 = arith.select %11, %204, %205 : vector<2x128xi1>, vector<2x128xf32>
    %207 = arith.maximumf %200, %203 : vector<2x128xf32>
    %208 = arith.maximumf %207, %206 : vector<2x128xf32>
    %209 = arith.subf %200, %208 : vector<2x128xf32>
    %210 = math.exp %209 : vector<2x128xf32>
    %211 = arith.subf %203, %208 : vector<2x128xf32>
    %212 = math.exp %211 : vector<2x128xf32>
    %213 = arith.addf %210, %212 : vector<2x128xf32>
    %214 = arith.subf %206, %208 : vector<2x128xf32>
    %215 = math.exp %214 : vector<2x128xf32>
    %216 = arith.addf %213, %215 : vector<2x128xf32>
    %217 = math.log %216 : vector<2x128xf32>
    %218 = arith.addf %208, %217 : vector<2x128xf32>
    %219 = arith.addi %13, %c6_i32 : i32
    %c1_i32_55 = arith.constant 1 : i32
    %220 = arith.cmpi sge, %219, %c1_i32_55 : i32
    %221 = vector.broadcast %219 : i32 to vector<2x1xi32>
    %222 = arith.cmpi slt, %221, %12 : vector<2x1xi32>
    %223 = vector.broadcast %220 : i1 to vector<2x1xi1>
    %224 = arith.andi %223, %222 : vector<2x1xi1>
    %225 = arith.index_cast %c6_i32 : i32 to index
    %c0_56 = arith.constant 0 : index
    %c0_57 = arith.constant 0 : index
    %226 = vector.load %arg1[%225, %c0_56, %c0_57] : memref<8x2x128xf32, #tpu.memory_space<vmem>>, vector<1x2x128xf32>
    %227 = vector.shape_cast %226 : vector<1x2x128xf32> to vector<2x128xf32>
    %228 = arith.addf %218, %227 : vector<2x128xf32>
    %229 = vector.shape_cast %224 : vector<2x1xi1> to vector<2x1xi1>
    %230 = vector.broadcast %229 : vector<2x1xi1> to vector<2x128xi1>
    %231 = arith.select %230, %228, %200 : vector<2x128xi1>, vector<2x128xf32>
    %c7_i32 = arith.constant 7 : i32
    %c1_i32_58 = arith.constant 1 : i32
    %232 = tpu.dynamic_rotate %231 by %c1_i32_58 dim 1 : vector<2x128xf32>, i32 -> vector<2x128xf32>
    %cst_59 = arith.constant -1.000000e+30 : f32
    %233 = vector.broadcast %cst_59 : f32 to vector<2x128xf32>
    %234 = arith.select %5, %232, %233 : vector<2x128xi1>, vector<2x128xf32>
    %c2_i32_60 = arith.constant 2 : i32
    %235 = tpu.dynamic_rotate %231 by %c2_i32_60 dim 1 : vector<2x128xf32>, i32 -> vector<2x128xf32>
    %cst_61 = arith.constant -1.000000e+30 : f32
    %236 = vector.broadcast %cst_61 : f32 to vector<2x128xf32>
    %237 = arith.select %11, %235, %236 : vector<2x128xi1>, vector<2x128xf32>
    %238 = arith.maximumf %231, %234 : vector<2x128xf32>
    %239 = arith.maximumf %238, %237 : vector<2x128xf32>
    %240 = arith.subf %231, %239 : vector<2x128xf32>
    %241 = math.exp %240 : vector<2x128xf32>
    %242 = arith.subf %234, %239 : vector<2x128xf32>
    %243 = math.exp %242 : vector<2x128xf32>
    %244 = arith.addf %241, %243 : vector<2x128xf32>
    %245 = arith.subf %237, %239 : vector<2x128xf32>
    %246 = math.exp %245 : vector<2x128xf32>
    %247 = arith.addf %244, %246 : vector<2x128xf32>
    %248 = math.log %247 : vector<2x128xf32>
    %249 = arith.addf %239, %248 : vector<2x128xf32>
    %250 = arith.addi %13, %c7_i32 : i32
    %c1_i32_62 = arith.constant 1 : i32
    %251 = arith.cmpi sge, %250, %c1_i32_62 : i32
    %252 = vector.broadcast %250 : i32 to vector<2x1xi32>
    %253 = arith.cmpi slt, %252, %12 : vector<2x1xi32>
    %254 = vector.broadcast %251 : i1 to vector<2x1xi1>
    %255 = arith.andi %254, %253 : vector<2x1xi1>
    %256 = arith.index_cast %c7_i32 : i32 to index
    %c0_63 = arith.constant 0 : index
    %c0_64 = arith.constant 0 : index
    %257 = vector.load %arg1[%256, %c0_63, %c0_64] : memref<8x2x128xf32, #tpu.memory_space<vmem>>, vector<1x2x128xf32>
    %258 = vector.shape_cast %257 : vector<1x2x128xf32> to vector<2x128xf32>
    %259 = arith.addf %249, %258 : vector<2x128xf32>
    %260 = vector.shape_cast %255 : vector<2x1xi1> to vector<2x1xi1>
    %261 = vector.broadcast %260 : vector<2x1xi1> to vector<2x128xi1>
    %262 = arith.select %261, %259, %231 : vector<2x128xi1>, vector<2x128xf32>
    %c8_i32_65 = arith.constant 8 : i32
    %c0_66 = arith.constant 0 : index
    %c0_67 = arith.constant 0 : index
    %263 = vector.load %arg5[%c0_66, %c0_67] : memref<2x128xf32, #tpu.memory_space<vmem>>, vector<2x128xf32>
    tpu.vector_store %arg5[%c0_66, %c0_67], %262 {strides = array<i32>} : memref<2x128xf32, #tpu.memory_space<vmem>>, vector<2x128xf32>,
    return
  }
  func.func @transform_0(%arg0: i32) -> (i32, i32, i32) {
    %c0_i32 = arith.constant 0 : i32
    %c0_i32_0 = arith.constant 0 : i32
    %c0_i32_1 = arith.constant 0 : i32
    return %arg0, %c0_i32, %c0_i32_0 : i32, i32, i32
  }
  func.func @transform_1(%arg0: i32) -> (i32, i32) {
    %c0_i32 = arith.constant 0 : i32
    %c0_i32_0 = arith.constant 0 : i32
    %c0_i32_1 = arith.constant 0 : i32
    return %c0_i32, %c0_i32_0 : i32, i32
  }
  func.func @transform_2(%arg0: i32) -> (i32, i32) {
    %c0_i32 = arith.constant 0 : i32
    %c0_i32_0 = arith.constant 0 : i32
    %c0_i32_1 = arith.constant 0 : i32
    return %c0_i32, %c0_i32_0 : i32, i32
  }
  func.func @transform_3(%arg0: i32) -> (i32, i32) {
    %c0_i32 = arith.constant 0 : i32
    %c0_i32_0 = arith.constant 0 : i32
    %c0_i32_1 = arith.constant 0 : i32
    return %c0_i32, %c0_i32_0 : i32, i32
  }
  func.func @transform_4(%arg0: i32) -> (i32, i32) {
    %c0_i32 = arith.constant 0 : i32
    %c0_i32_0 = arith.constant 0 : i32
    %c0_i32_1 = arith.constant 0 : i32
    return %c0_i32, %c0_i32_0 : i32, i32
  }
}

</mosaic_0001>

<bundles_post_ra>
// kernel: ssl_datasr_forward.2
= control target key start
LH: loop header
LB: loop body
LE: loop exit
PB: predicated region body
PF: predicated region fallthrough
CT: control target
= control target key end

     0   :  { %12 = vsyncpa [#allocation3], 0  ;;  %s946_s0 = inlined_call_operand.vmem [shape: f32[32,64], index: 0, kind: input, shape index: {}]   ;;  %s947_s1 = inlined_call_operand.vmem [shape: bf16[64,32], index: 1, kind: input, shape index: {}]   ;;  %s948_s2 = inlined_call_operand.vmem [shape: f32[1,32], index: 2, kind: input, shape index: {}]   ;;  %s949_s3 = inlined_call_operand.vmem [shape: bf16[32,128], index: 3, kind: input, shape index: {}]   ;;  %s950_s4 = inlined_call_operand.vmem [shape: f32[1,128], index: 4, kind: input, shape index: {}]   ;;  %s951_s5 = inlined_call_operand.hbm [shape: bf16[32,32], index: 5, kind: output, shape index: {0}]   ;;  %s952_s6 = inlined_call_operand.vmem [shape: f32[32,128], index: 6, kind: output, shape index: {1}]  }
   0x1   :  { %14 = vsyncpa [#allocation3 + $0x1], 0  ;;  %s806_s21 = smov 0   ;;  %s808_s22 = smov 0  }
   0x2   :  { %s810_s23 = smov 0   ;;  %s812_s24 = smov 0  }
   0x3 LB: > { %s827_s25 = sadd.s32 4294967295, %s764_s24   ;;  %s584_s26 = sadd.s32 4294967294, %s764_s24   ;;  %s764_s24 = sphi %s812_s24, %s958_s24   ;;  %s760_s23 = sphi %s810_s23, %s957_s23   ;;  %s756_s22 = sphi %s808_s22, %s956_s22   ;;  %s752_s21 = sphi %s806_s21, %s955_s21  }
   0x4   : > { %s831_s27 = sadd.s32 1, %s764_s24   ;;  %s137_s28 = sadd.s32 1, %s760_s23 }
   0x5   : > { %s134_s29 = ssub.s32 %s764_s24, %s831_s27  ;;  %p147_p0 = scmp.ne.s32.totalorder %s760_s23, %s756_s22 }
   0x6   : > { %p135_p1 = scmp.eq.s32.totalorder %s134_s29, 0  ;;  %p148_p2 = scmp.eq.s32.totalorder %s827_s25, 1 }
   0x7   : > { %p153_p3 = scmp.ne.s32.totalorder %s756_s22, %s752_s21  ;;  %p154_p4 = scmp.eq.s32.totalorder %s584_s26, 1 }
   0x8   : > { %s842_s30 = scalar_select %p135_p1, %s760_s23, %s137_s28  }
   0x9   : > { %p844_p5 = por %p148_p2, %p147_p0  ;;  %p848_p6 = por %p154_p4, %p153_p3 }
   0xa   : > { %p587_p7 = scmp.ge.s32.totalorder %s764_s24, 1  ;;  %p219_p8 = scmp.lt.s32.totalorder %s764_s24, 3 }
   0xc   : > { %p220_p9 = pnand %p587_p7, %p219_p8 }
   0xd   : > { %v684_v0 = vld [vmem:[%s947_s1] sm:$0xff] (!%p220_p9)   ;;  %v766_v1 = vmov (!%p220_p9), 0.0   ;;  %v685_v2 = vld [vmem:[%s947_s1 + $0x8] sm:$0xff] (!%p220_p9)   ;;  %vm767_vm0 = vmmov (!%p220_p9), 0   ;;  %s589_s13 = sshll.u32 (!%p220_p9), %s827_s25, 1  ;;  %v686_v3 = vld [vmem:[%s947_s1 + $0x10] sm:$0xff] (!%p220_p9)  }
   0xe   : > { %223 = sbr.rel (%p220_p9) target bundleno = 808 (0x328), region = 40  ;;  %621 = vmatprep.subr.bf16.mxu0 (!%p220_p9), %v766_v1  ;;  %633 = vmatprep.subr.bf16.mxu1 (!%p220_p9), %v766_v1  ;;  %p255_p10 = scmp.lt.s32.totalorder (!%p220_p9), %s589_s13, 3  ;;  %v687_v4 = vld [vmem:[%s947_s1 + $0x18] sm:$0xff] (!%p220_p9)   ;;  %vm310_vm1 = vcmask (!%p220_p9), 523264   ;;  %v688_v8 = vld [vmem:[%s949_s3] sm:$0xff] (!%p220_p9)   ;;  %v689_v9 = vld [vmem:[%s949_s3 + $0x8] sm:$0xff] (!%p220_p9)  }
   0xf   : > { %622 = vmatpush3.bf16.msra.mxu0 (!%p220_p9), %v684_v0  ;;  %629 = vmatprep.mubr.msk.bf16.mxu0 (!%p220_p9), %vm767_vm0, %v766_v1  ;;  %v593_v10 = vld [vmem:[%s948_s2] ss:$0 sm:$0xff] (!%p220_p9)  ;;  %s244_s14 = sand.u32 (!%p220_p9), 1, %s756_s22   ;;  %vm381_vm2 = vcmask (!%p220_p9), 257024   ;;  %vm407_vm3 = vcmask (!%p220_p9), 261120   ;;  %s612_s20 = sshll.u32 (!%p220_p9), %s827_s25, 7 }
  0x10   : > { %623 = vmatprep.subr.bf16.mxu0 (!%p220_p9), %v766_v1  ;;  %637 = vmatprep.mubr.msk.bf16.mxu1 (!%p220_p9), %vm767_vm0, %v766_v1  ;;  %s588_s15 = sshll.u32 (!%p220_p9), %s244_s14, 3  ;;  %v601_v38 = vld [vmem:[%s950_s4] ss:$0 sm:$0xff] (!%p220_p9)  ;;  %s894_s9 = scalar_lea.hbm (!%p220_p9), %s951_s5, %s612_s20 }
  0x11   : > { %634 = vmatpush3.bf16.msra.mxu1 (!%p220_p9), %v688_v8  ;;  %s246_s17 = scalar_lea.vmem (!%p220_p9), [#allocation2], %s588_s15  ;;  %s900_s10 = scalar_lea.sflag (!%p220_p9), [#allocation3], %s244_s14 }
  0x12   : > { %635 = vmatprep.subr.bf16.mxu1 (!%p220_p9), %v766_v1  ;;  %s493_s26 = sshll.u32 (!%p220_p9), %s246_s17, 4  ;;  %s768_s25 = smov (!%p220_p9), [#allocation2]   ;;  %s896_s26 = int_to_ptr.vmem [resolvable:$true] %s493_s26 }
  0x13   : > { %624 = vmatpush3.bf16.msra.mxu0 (!%p220_p9), %v685_v2  ;;  %s702_s11 = scalar_lea.vmem (!%p220_p9), %s896_s26, 128  ;;  %s706_s12 = sshll.u32 (!%p220_p9), %s768_s25, 4  ;;  %s707_s12 = int_to_ptr.vmem [resolvable:$false] %s706_s12 }
  0x14   : > { %625 = vmatprep.subr.bf16.mxu0 (!%p220_p9), %v766_v1  ;;  %p703_p11 = scmp.ne.s32.totalorder (!%p220_p9), %s896_s26, %s702_s11  ;;  %s708_s15 = scalar_lea.vmem (!%p220_p9), %s707_s12, 256 }
  0x15   : > { %s960_s13 = smov (!%p255_p10, %s589_s13), 3  ;;  %636 = vmatpush3.bf16.msra.mxu1 %v689_v9  ;;  %p709_p0 = scmp.lt.s32.totalorder %s896_s26, %s707_s12 }
  0x16   : > { %s590_s16 = sshll.u32 %s960_s13, 3  ;;  %p704_p12 = pnand %p703_p11, %p844_p5 }
  0x17   : > { %s258_s19 = scalar_lea.vmem %s946_s0, %s590_s16  ;;  %626 = vmatpush3.bf16.msra.mxu0 %v686_v3  ;;  %p710_p1 = scmp.lt.s32.totalorder %s708_s15, %s702_s11 }
  0x18   : > { %v268_v5 = vld [vmem:[%s258_s19] sm:$0xff]  ;;  %v269_v6 = vld [vmem:[%s258_s19 + $0x8] sm:$0xff]  ;;  %627 = vmatprep.subr.bf16.mxu0 %v766_v1  ;;  %p705_p13 = pneg %p704_p12 }
  0x19   : > { %v270_v7 = vpack.c.bf16 %v269_v6, %v268_v5  ;;  %p711_p2 = por %p710_p1, %p709_p0 }
  0x1b   : > { %628 = vmatpush3.bf16.msra.mxu0 %v687_v4  ;;  %p712_p3 = pnand %p711_p2, %p705_p13 }
  0x1e   : > { %630 = vmatmul.mubr.msk.bf16.vlgmr.msra.gmra.mrb[0].mxu0 %vm310_vm1, %v270_v7 }
  0xf1   : > { %v348_v11 = vpop.f32.mrb[0].mxu0 }
  0xf2   : > { %v349_v12 = vadd.f32 %v593_v10, %v348_v11  ;;  %v631_v13 = vpop.f32.mrb[1].mxu0 }
  0xf3   : > { %v351_v14 = vpop.f32.mrb[2].mxu0 }
  0xf4   : > { %v355_v15 = vmul.f32 %v349_v12, %v349_v12  ;;  %v352_v16 = vadd.f32 %v593_v10, %v351_v14  ;;  %v632_v17 = vpop.f32.mrb[3].mxu0 }
  0xf6   : > { %v357_v18 = vmul.f32 %v355_v15, %v349_v12  ;;  %v356_v19 = vmul.f32 %v352_v16, %v352_v16 }
  0xf8   : > { %v359_v20 = vmul.f32 0.044715, %v357_v18  ;;  %v358_v21 = vmul.f32 %v356_v19, %v352_v16 }
  0xfa   : > { %v361_v22 = vadd.f32 %v359_v20, %v349_v12  ;;  %v360_v23 = vmul.f32 0.044715, %v358_v21 }
  0xfc   : > { %v363_v24 = vmul.f32 0.7978846, %v361_v22  ;;  %v362_v25 = vadd.f32 %v360_v23, %v352_v16 }
  0xfe   : > { %690 = vtanh.f32 %v363_v24  ;;  %v364_v26 = vmul.f32 0.7978846, %v362_v25 }
 0x100   : > { %692 = vtanh.f32 %v364_v26 }
 0x108   : > { %v691_v27 = vpop.eup %690 }
 0x109   : > { %v367_v28 = vadd.f32 1.0, %v691_v27 }
 0x10a   : > { %v693_v29 = vpop.eup %692 }
 0x10b   : > { %v369_v30 = vmul.f32 0.5, %v367_v28  ;;  %v368_v31 = vadd.f32 1.0, %v693_v29 }
 0x10d   : > { %v371_v32 = vmul.f32 %v369_v30, %v349_v12  ;;  %v370_v33 = vmul.f32 0.5, %v368_v31 }
 0x10f   : > { %v610_v34 = vpack.c.bf16 %v371_v32, %v371_v32  ;;  %v372_v35 = vmul.f32 %v370_v33, %v352_v16 }
 0x111   : > { %v611_v36 = vpack.c.bf16 %v372_v35, %v372_v35  ;;  %v373_v37 = vpack.c.bf16 %v372_v35, %v371_v32  ;;  %382 = vst.msk [vmem:[%s246_s17] sm:$0xf] %vm381_vm2, %v610_v34 }
 0x113   : > { %638 = vmatmul.mubr.msk.bf16.vlgmr.msra.gmra.mrb[0].mxu1 %vm407_vm3, %v373_v37  ;;  %383 = vst.msk [vmem:[%s246_s17 + $0x4] sm:$0xf] %vm381_vm2, %v611_v36 }
 0x1e6   : > { %v445_v39 = vpop.f32.mrb[0].mxu1 }
 0x1e7   : > { %v446_v40 = vadd.f32 %v601_v38, %v445_v39  ;;  %v639_v41 = vpop.f32.mrb[1].mxu1 }
 0x1e8   : > { %v448_v42 = vpop.f32.mrb[2].mxu1 }
 0x1e9   : > { %452 = vmax.xlane.f32.xlu0 %v446_v40  ;;  %v640_v43 = vpop.f32.mrb[3].mxu1  ;;  %v449_v44 = vadd.f32 %v601_v38, %v448_v42 }
 0x1ed   : > { %454 = vmax.xlane.f32.xlu0 %v449_v44 }
 0x276   : > { %v453_v45 = vpop.xlane.xlu0 %452 }
 0x277   : > { %v456_v46 = vsub.f32 %v446_v40, %v453_v45 }
 0x279   : > { %v458_v47 = vmul.f32 1.442695, %v456_v46 }
 0x27a   : > { %v455_v48 = vpop.xlane.xlu0 %454 }
 0x27b   : > { %v457_v49 = vsub.f32 %v449_v44, %v455_v48  ;;  %694 = vpow2.f32 %v458_v47 }
 0x27d   : > { %v460_v50 = vmul.f32 1.442695, %v457_v49 }
 0x27f   : > { %696 = vpow2.f32 %v460_v50 }
 0x285   : > { %v695_v51 = vpop.eup %694 }
 0x286   : > { %462 = vadd.xlane.f32.xlu1 %v695_v51 }
 0x289   : > { %v697_v52 = vpop.eup %696 }
 0x28a   : > { %464 = vadd.xlane.f32.xlu1 %v697_v52 }
 0x28b   : > { %715 = shalt.err (!%p712_p3)
}
 0x28c   : > { %s716_s14 = scalar_lea.hbm %s894_s9, 128  ;;  %s720_s19 = scalar_lea.hbm %s951_s5, 256 }
 0x28d   : > { %p717_p4 = scmp.ne.s32.totalorder %s894_s9, %s716_s14  ;;  %p721_p9 = scmp.lt.u32.totalorder %s894_s9, %s951_s5 }
 0x28e   : > { %p722_p10 = scmp.lt.u32.totalorder %s720_s19, %s716_s14  ;;  %p724_p12 = scmp.lt.u32.totalorder %s716_s14, %s894_s9 }
 0x28f   : > { %p718_p7 = pnand %p717_p4, %p844_p5 }
 0x290   : > { %p723_p11 = por %p722_p10, %p721_p9 }
 0x291   : > { %p719_p8 = pneg %p718_p7 }
 0x292   : > { %p725_p13 = por %p724_p12, %p723_p11 }
 0x294   : > { %p726_p0 = pnand %p725_p13, %p719_p8 }
 0x296   : > { %729 = shalt.err (!%p726_p0)
}
 0x297   : > { %s769_s29 = smov 64   ;;  %s770_s11 = smov 4  }
 0x298   : > { %641 = dma.vmem_to_hbm [thread:$0]  (%p844_p5), %s896_s26, 128, %s894_s9, %s900_s10, %s769_s29, %s769_s29, %s770_s11  }
 0x299   : > { %s265_s15 = scalar_lea.vmem %s952_s6, %s590_s16 }
 0x313   : > { %v463_v53 = vpop.xlane.xlu1 %462 }
 0x314   : > { %698 = vlog2.f32 %v463_v53 }
 0x317   : > { %v465_v54 = vpop.xlane.xlu1 %464 }
 0x318   : > { %700 = vlog2.f32 %v465_v54 }
 0x31e   : > { %v699_v55 = vpop.eup %698 }
 0x31f   : > { %v467_v56 = vmul.f32 0.6931472, %v699_v55 }
 0x321   : > { %v470_v57 = vsub.f32 %v456_v46, %v467_v56 }
 0x322   : > { %v701_v58 = vpop.eup %700 }
 0x323   : > { %472 = vst [vmem:[%s265_s15] sm:$0xff] %v470_v57  ;;  %v469_v59 = vmul.f32 0.6931472, %v701_v58 }
 0x325   : > { %v471_v60 = vsub.f32 %v457_v49, %v469_v59 }
 0x327   : > { %473 = vst [vmem:[%s265_s15 + $0x8] sm:$0xff] %v471_v60 }
 0x328 PF: > { %p647_p5 = scmp.ge.s32.totalorder %s764_s24, 2  ;;  %s512_s7 = sand.u32 1, %s752_s21  }
 0x329   : > { %s513_s26 = scalar_lea.sflag [#allocation3], %s512_s7 }
 0x32a   : > { %p644_p1 = pnand %p647_p5, %p848_p6 }
 0x32c   : > { %747 = dma.done.wait (!%p644_p1), %s513_s26, 128  }
 0x32d   : > { %749 = vsyncadd (!%p644_p1), %s513_s26, 4294967168  ;;  %p17_p2 = scmp.ge.s32.totalorder %s831_s27, 4   ;;  %s955_s21 = smov %s756_s22 }
 0x32e   : > { %s956_s22 = smov %s760_s23  ;;  %s957_s23 = smov %s842_s30 }
 0x32f   : > { %s958_s24 = smov %s831_s27  ;;  %19 = sbr.rel (!%p17_p2) target bundleno = 3 (0x3), region = 87 }
 0x336   :  { %526 = vsyncpa [#allocation3], 1 }
 0x337   :  { %528 = vsyncpa [#allocation3 + $0x1], 1 }

// kernel: ssl_datasr_forward.3
= control target key start
LH: loop header
LB: loop body
LE: loop exit
PB: predicated region body
PF: predicated region fallthrough
CT: control target
= control target key end

     0   :  { %s670_s15 = smov 0   ;;  %s801_s0 = inlined_call_operand.vmem [shape: f32[16,2,128], index: 0, kind: input, shape index: {}]   ;;  %s802_s1 = inlined_call_operand.vmem [shape: f32[2,128], index: 1, kind: input, shape index: {}]   ;;  %s803_s2 = inlined_call_operand.vmem [shape: f32[2,128], index: 2, kind: input, shape index: {}]   ;;  %s804_s3 = inlined_call_operand.vmem [shape: s32[2,1], index: 3, kind: input, shape index: {}]   ;;  %s805_s4 = inlined_call_operand.vmem [shape: f32[2,128], index: 4, kind: output, shape index: {}]  }
   0x1 LB: > { %s540_s16 = sadd.s32 4294967295, %s640_s15   ;;  %p543_p0 = scmp.ge.s32.totalorder %s640_s15, 1  ;;  %s640_s15 = sphi %s670_s15, %s14_s15  }
   0x2   : > { %p158_p1 = scmp.lt.s32.totalorder %s640_s15, 3 }
   0x4   : > { %p159_p2 = pnand %p543_p0, %p158_p1 }
   0x5   : > { %s678_s17 = sshll.u32 (!%p159_p2), %s540_s16, 3  ;;  %p546_p4 = scmp.ne.s32.totalorder (!%p159_p2), %s540_s16, 0 }
   0x6   : > { %162 = sbr.rel (%p159_p2) target bundleno = 1292 (0x50c), region = 36  ;;  %p180_p3 = scmp.lt.s32.totalorder (!%p159_p2), %s678_s17, 15 }
   0xd   : > { %s181_s18 = scalar_select %p180_p3, %s678_s17, 15 }
   0xe   : > { %188 = sbr.rel (%p546_p4) target bundleno = 21 (0x15), region = 40  ;;  %v189_v0 = vld [vmem:[%s803_s2] sm:$0x3] (!%p546_p4) }
   0xf   : > { %s545_s19 = sshll.u32 %s181_s18, 1  ;;  %190 = vst [vmem:[%s805_s4] sm:$0x3] (!%p546_p4), %v189_v0 }
  0x10   : > { %s685_s22 = scalar_lea.vmem %s801_s0, %s545_s19 }
  0x15 PF: > { %s642_s29 = smov 1   ;;  %v643_v2 = vmov 0   ;;  %v701_v3 = vld [vmem:[%s804_s3] sm:$0x3]  ;;  %p223_p5 = scmp.ge.s32.totalorder %s678_s17, 1  ;;  %v224_v4 = vstv %s678_s17  ;;  %v191_v7 = vlaneseq }
  0x16   : > { %v200_v1 = vld [vmem:[%s805_s4] sm:$0x3]  ;;  %568 = vset.pattern.permute.xlu1 %v643_v2  ;;  %569 = vset.pattern.permute.xlu0 %v643_v2  ;;  %vm225_vm0 = vcmp.lt.s32.totalorder %v224_v4, %v701_v3  ;;  %s644_s7 = smov 2   ;;  %s260_s10 = sadd.s32 1, %s678_s17  ;;  %v548_v59 = vld [vmem:[%s685_s22 + $0x2] sm:$0x3] }
  0x17   : > { %201 = vrot.lane.b32.xlu0 %v200_v1, %s642_s29  ;;  %s226_s6 = scalar_select %p223_p5, 1, 0  ;;  %v709_v8 = vand.u32 127, %v191_v7  ;;  %v195_v9 = vld [vmem:[%s802_s1] sm:$0x3]  ;;  %v262_v29 = vstv %s260_s10 }
  0x18   : > { %vm196_vm5 = vcmp.gt.f32.partialorder %v195_v9, 0.5  ;;  %p261_p6 = scmp.ge.s32.totalorder %s260_s10, 1  ;;  %v230_v33 = vld [vmem:[%s685_s22] sm:$0x3]  ;;  %vm263_vm7 = vcmp.lt.s32.totalorder %v262_v29, %v701_v3  ;;  %s299_s12 = sadd.s32 2, %s678_s17 }
  0x19   : > { %v227_v5 = vstv %s226_s6  ;;  %vm193_vm3 = vcmp.ge.s32.totalorder %v709_v8, 1  ;;  %vm194_vm4 = vcmp.ge.s32.totalorder %v709_v8, 2  ;;  %p300_p7 = scmp.ge.s32.totalorder %s299_s12, 1  ;;  %s338_s13 = sadd.s32 3, %s678_s17  ;;  %v301_v56 = vstv %s299_s12 }
  0x1a   : > { %vm228_vm1 = vcmp.eq.s32.totalorder %v227_v5, 1  ;;  %vm718_vm6 = vmand %vm194_vm4, %vm196_vm5  ;;  %s264_s11 = scalar_select %p261_p6, 1, 0  ;;  %vm302_vm11 = vcmp.lt.s32.totalorder %v301_v56, %v701_v3  ;;  %v340_v62 = vstv %s338_s13 }
  0x1b   : > { %204 = vrot.lane.b32.xlu0 %v200_v1, %s644_s7  ;;  %vm229_vm2 = vmand %vm228_vm1, %vm225_vm0  ;;  %s303_s14 = scalar_select %p300_p7, 1, 0  ;;  %vm341_vm15 = vcmp.lt.s32.totalorder %v340_v62, %v701_v3 }
  0x1c   : > { %v232_v6 = vsel %vm229_vm2, 1, %v643_v2  ;;  %v265_v30 = vstv %s264_s11  ;;  %p339_p8 = scmp.ge.s32.totalorder %s338_s13, 1  ;;  %s377_s18 = sadd.s32 4, %s678_s17 }
  0x1d   : > { %234 = vperm.xlu1 %568, %v232_v6   ;;  %vm266_vm8 = vcmp.eq.s32.totalorder %v265_v30, 1  ;;  %v304_v57 = vstv %s303_s14  ;;  %p378_p9 = scmp.ge.s32.totalorder %s377_s18, 1  ;;  %s416_s20 = sadd.s32 5, %s678_s17 }
  0x1e   : > { %vm267_vm10 = vmand %vm266_vm8, %vm263_vm7  ;;  %s342_s16 = scalar_select %p339_p8, 1, 0  ;;  %vm305_vm12 = vcmp.eq.s32.totalorder %v304_v57, 1 }
  0x1f   : > { %v271_v37 = vsel %vm267_vm10, 1, %v643_v2  ;;  %vm306_vm14 = vmand %vm305_vm12, %vm302_vm11  ;;  %s381_s19 = scalar_select %p378_p9, 1, 0 }
  0x20   : > { %v343_v63 = vstv %s342_s16  ;;  %v310_v4 = vsel %vm306_vm14, 1, %v643_v2  ;;  %p417_p10 = scmp.ge.s32.totalorder %s416_s20, 1  ;;  %s455_s23 = sadd.s32 6, %s678_s17 }
  0x21   : > { %vm344_vm0 = vcmp.eq.s32.totalorder %v343_v63, 1  ;;  %p456_p11 = scmp.ge.s32.totalorder %s455_s23, 1  ;;  %s494_s25 = sadd.s32 7, %s678_s17 }
  0x22   : > { %vm345_vm1 = vmand %vm344_vm0, %vm341_vm15  ;;  %s420_s21 = scalar_select %p417_p10, 1, 0 }
  0x23   : > { %v349_v5 = vsel %vm345_vm1, 1, %v643_v2  ;;  %s459_s24 = scalar_select %p456_p11, 1, 0 }
  0x24   : > { %p495_p12 = scmp.ge.s32.totalorder %s494_s25, 1 }
  0x26   : > { %s498_s26 = scalar_select %p495_p12, 1, 0 }
  0x89   : > { %v202_v10 = vpop.permute.xlu0 %201 }
  0x8a   : > { %v203_v11 = vsel %vm193_vm3, %v202_v10, -1e+30 }
  0x8b   : > { %v207_v13 = vmax.f32 %v200_v1, %v203_v11 }
  0x8d   : > { %v205_v14 = vpop.permute.xlu0 %204 }
  0x8e   : > { %v206_v15 = vsel %vm718_vm6, %v205_v14, -1e+30 }
  0x8f   : > { %v208_v16 = vmax.f32 %v207_v13, %v206_v15 }
  0x91   : > { %v209_v17 = vsub.f32 %v200_v1, %v208_v16  ;;  %v212_v18 = vsub.f32 %v203_v11, %v208_v16  ;;  %v216_v19 = vsub.f32 %v206_v15, %v208_v16 }
  0x93   : > { %v210_v20 = vmul.f32 1.442695, %v209_v17  ;;  %v213_v21 = vmul.f32 1.442695, %v212_v18  ;;  %v217_v22 = vmul.f32 1.442695, %v216_v19 }
  0x95   : > { %570 = vpow2.f32 %v210_v20 }
  0x96   : > { %572 = vpow2.f32 %v213_v21 }
  0x97   : > { %574 = vpow2.f32 %v217_v22 }
  0x9c   : > { %v235_v31 = vpop.permute.xlu1 %234 }
  0x9d   : > { %vm236_vm9 = vcmp.eq.s32.totalorder %v235_v31, 1 }
  0x9f   : > { %v571_v23 = vpop.eup %570 }
  0xa0   : > { %v573_v24 = vpop.eup %572 }
  0xa1   : > { %v215_v25 = vadd.f32 %v573_v24, %v571_v23  ;;  %v575_v26 = vpop.eup %574 }
  0xa3   : > { %v219_v27 = vadd.f32 %v575_v26, %v215_v25 }
  0xa5   : > { %576 = vlog2.f32 %v219_v27  ;;  %v549_v27 = vld [vmem:[%s685_s22 + $0x4] sm:$0x3] }
  0xaf   : > { %v577_v28 = vpop.eup %576 }
  0xb0   : > { %v221_v32 = vmul.f32 0.6931472, %v577_v28 }
  0xb2   : > { %v222_v34 = vadd.f32 %v221_v32, %v208_v16 }
  0xb4   : > { %v231_v35 = vadd.f32 %v230_v33, %v222_v34 }
  0xb6   : > { %v237_v36 = vsel %vm236_vm9, %v231_v35, %v200_v1 }
  0xb7   : > { %241 = vrot.lane.b32.xlu0 %v237_v36, %s644_s7  ;;  %238 = vrot.lane.b32.xlu1 %v237_v36, %s642_s29 }
  0xbb   : > { %273 = vperm.xlu1 %568, %v271_v37  }
 0x129   : > { %v242_v38 = vpop.permute.xlu0 %241  ;;  %v239_v39 = vpop.permute.xlu1 %238 }
 0x12a   : > { %v240_v40 = vsel %vm193_vm3, %v239_v39, -1e+30  ;;  %v243_v42 = vsel %vm718_vm6, %v242_v38, -1e+30 }
 0x12b   : > { %v244_v41 = vmax.f32 %v237_v36, %v240_v40 }
 0x12d   : > { %v245_v43 = vmax.f32 %v244_v41, %v243_v42 }
 0x12f   : > { %v246_v44 = vsub.f32 %v237_v36, %v245_v43  ;;  %v249_v45 = vsub.f32 %v240_v40, %v245_v43  ;;  %v253_v46 = vsub.f32 %v243_v42, %v245_v43 }
 0x131   : > { %v247_v47 = vmul.f32 1.442695, %v246_v44  ;;  %v250_v48 = vmul.f32 1.442695, %v249_v45  ;;  %v254_v49 = vmul.f32 1.442695, %v253_v46 }
 0x133   : > { %578 = vpow2.f32 %v247_v47 }
 0x134   : > { %580 = vpow2.f32 %v250_v48 }
 0x135   : > { %582 = vpow2.f32 %v254_v49 }
 0x13a   : > { %v274_v61 = vpop.permute.xlu1 %273 }
 0x13b   : > { %vm275_vm13 = vcmp.eq.s32.totalorder %v274_v61, 1 }
 0x13d   : > { %v579_v50 = vpop.eup %578 }
 0x13e   : > { %v581_v51 = vpop.eup %580 }
 0x13f   : > { %v252_v52 = vadd.f32 %v581_v51, %v579_v50  ;;  %v583_v53 = vpop.eup %582  ;;  %v379_v50 = vstv %s377_s18  ;;  %v382_v51 = vstv %s381_s19 }
 0x140   : > { %vm380_vm4 = vcmp.lt.s32.totalorder %v379_v50, %v701_v3  ;;  %vm383_vm5 = vcmp.eq.s32.totalorder %v382_v51, 1 }
 0x141   : > { %v256_v54 = vadd.f32 %v583_v53, %v252_v52  ;;  %v550_v53 = vld [vmem:[%s685_s22 + $0x6] sm:$0x3]  ;;  %vm384_vm8 = vmand %vm383_vm5, %vm380_vm4 }
 0x143   : > { %584 = vlog2.f32 %v256_v54 }
 0x14d   : > { %v585_v55 = vpop.eup %584 }
 0x14e   : > { %v258_v58 = vmul.f32 0.6931472, %v585_v55 }
 0x150   : > { %v259_v60 = vadd.f32 %v258_v58, %v245_v43  ;;  %v388_v58 = vsel %vm384_vm8, 1, %v643_v2 }
 0x152   : > { %v270_v0 = vadd.f32 %v548_v59, %v259_v60 }
 0x154   : > { %v276_v1 = vsel %vm275_vm13, %v270_v0, %v237_v36 }
 0x155   : > { %280 = vrot.lane.b32.xlu1 %v276_v1, %s644_s7  ;;  %277 = vrot.lane.b32.xlu0 %v276_v1, %s642_s29 }
 0x159   : > { %312 = vperm.xlu0 %569, %v310_v4  }
 0x15d   : > { %351 = vperm.xlu0 %569, %v349_v5  }
 0x1c7   : > { %v281_v6 = vpop.permute.xlu1 %280  ;;  %v278_v7 = vpop.permute.xlu0 %277 }
 0x1c8   : > { %v279_v9 = vsel %vm193_vm3, %v278_v7, -1e+30  ;;  %v282_v11 = vsel %vm718_vm6, %v281_v6, -1e+30 }
 0x1c9   : > { %v283_v10 = vmax.f32 %v276_v1, %v279_v9 }
 0x1cb   : > { %v284_v13 = vmax.f32 %v283_v10, %v282_v11 }
 0x1cd   : > { %v285_v14 = vsub.f32 %v276_v1, %v284_v13  ;;  %v288_v15 = vsub.f32 %v279_v9, %v284_v13  ;;  %v292_v16 = vsub.f32 %v282_v11, %v284_v13 }
 0x1cf   : > { %v286_v17 = vmul.f32 1.442695, %v285_v14  ;;  %v289_v18 = vmul.f32 1.442695, %v288_v15  ;;  %v293_v19 = vmul.f32 1.442695, %v292_v16 }
 0x1d1   : > { %586 = vpow2.f32 %v286_v17  ;;  %v418_v17 = vstv %s416_s20 }
 0x1d2   : > { %588 = vpow2.f32 %v289_v18  ;;  %v421_v18 = vstv %s420_s21  ;;  %vm419_vm9 = vcmp.lt.s32.totalorder %v418_v17, %v701_v3 }
 0x1d3   : > { %590 = vpow2.f32 %v293_v19  ;;  %vm422_vm10 = vcmp.eq.s32.totalorder %v421_v18, 1 }
 0x1d4   : > { %vm423_vm12 = vmand %vm422_vm10, %vm419_vm9 }
 0x1d8   : > { %v313_v29 = vpop.permute.xlu0 %312 }
 0x1d9   : > { %vm314_vm2 = vcmp.eq.s32.totalorder %v313_v29, 1 }
 0x1db   : > { %v587_v20 = vpop.eup %586 }
 0x1dc   : > { %v589_v21 = vpop.eup %588  ;;  %v352_v54 = vpop.permute.xlu0 %351 }
 0x1dd   : > { %v291_v22 = vadd.f32 %v589_v21, %v587_v20  ;;  %v591_v23 = vpop.eup %590  ;;  %vm353_vm7 = vcmp.eq.s32.totalorder %v352_v54, 1  ;;  %v551_v20 = vld [vmem:[%s685_s22 + $0x8] sm:$0x3] }
 0x1df   : > { %v295_v24 = vadd.f32 %v591_v23, %v291_v22 }
 0x1e1   : > { %592 = vlog2.f32 %v295_v24 }
 0x1eb   : > { %v593_v25 = vpop.eup %592 }
 0x1ec   : > { %v297_v26 = vmul.f32 0.6931472, %v593_v25  ;;  %v427_v25 = vsel %vm423_vm12, 1, %v643_v2 }
 0x1ee   : > { %v298_v28 = vadd.f32 %v297_v26, %v284_v13 }
 0x1f0   : > { %v309_v30 = vadd.f32 %v549_v27, %v298_v28 }
 0x1f2   : > { %v315_v31 = vsel %vm314_vm2, %v309_v30, %v276_v1 }
 0x1f3   : > { %316 = vrot.lane.b32.xlu1 %v315_v31, %s642_s29 }
 0x1f7   : > { %319 = vrot.lane.b32.xlu1 %v315_v31, %s644_s7 }
 0x265   : > { %v317_v32 = vpop.permute.xlu1 %316 }
 0x266   : > { %v318_v33 = vsel %vm193_vm3, %v317_v32, -1e+30 }
 0x267   : > { %v322_v34 = vmax.f32 %v315_v31, %v318_v33 }
 0x269   : > { %v320_v35 = vpop.permute.xlu1 %319 }
 0x26a   : > { %v321_v36 = vsel %vm718_vm6, %v320_v35, -1e+30 }
 0x26b   : > { %v323_v37 = vmax.f32 %v322_v34, %v321_v36 }
 0x26d   : > { %v324_v38 = vsub.f32 %v315_v31, %v323_v37  ;;  %v327_v39 = vsub.f32 %v318_v33, %v323_v37  ;;  %v331_v40 = vsub.f32 %v321_v36, %v323_v37 }
 0x26f   : > { %v325_v41 = vmul.f32 1.442695, %v324_v38  ;;  %v328_v42 = vmul.f32 1.442695, %v327_v39  ;;  %v332_v43 = vmul.f32 1.442695, %v331_v40 }
 0x271   : > { %594 = vpow2.f32 %v325_v41 }
 0x272   : > { %596 = vpow2.f32 %v328_v42 }
 0x273   : > { %598 = vpow2.f32 %v332_v43 }
 0x27b   : > { %v595_v44 = vpop.eup %594 }
 0x27c   : > { %v597_v45 = vpop.eup %596 }
 0x27d   : > { %v330_v46 = vadd.f32 %v597_v45, %v595_v44  ;;  %v599_v47 = vpop.eup %598  ;;  %v457_v44 = vstv %s455_s23  ;;  %v460_v45 = vstv %s459_s24 }
 0x27e   : > { %vm458_vm13 = vcmp.lt.s32.totalorder %v457_v44, %v701_v3  ;;  %vm461_vm14 = vcmp.eq.s32.totalorder %v460_v45, 1 }
 0x27f   : > { %v334_v48 = vadd.f32 %v599_v47, %v330_v46  ;;  %v552_v47 = vld [vmem:[%s685_s22 + $0xa] sm:$0x3]  ;;  %vm462_vm0 = vmand %vm461_vm14, %vm458_vm13 }
 0x281   : > { %600 = vlog2.f32 %v334_v48 }
 0x28b   : > { %v601_v49 = vpop.eup %600 }
 0x28c   : > { %v336_v52 = vmul.f32 0.6931472, %v601_v49 }
 0x28e   : > { %v337_v55 = vadd.f32 %v336_v52, %v323_v37  ;;  %v466_v52 = vsel %vm462_vm0, 1, %v643_v2 }
 0x290   : > { %v348_v56 = vadd.f32 %v550_v53, %v337_v55 }
 0x292   : > { %v354_v57 = vsel %vm353_vm7, %v348_v56, %v315_v31 }
 0x293   : > { %358 = vrot.lane.b32.xlu0 %v354_v57, %s644_s7  ;;  %355 = vrot.lane.b32.xlu1 %v354_v57, %s642_s29 }
 0x297   : > { %390 = vperm.xlu1 %568, %v388_v58  }
 0x305   : > { %v359_v59 = vpop.permute.xlu0 %358  ;;  %v356_v60 = vpop.permute.xlu1 %355 }
 0x306   : > { %v357_v61 = vsel %vm193_vm3, %v356_v60, -1e+30  ;;  %v360_v63 = vsel %vm718_vm6, %v359_v59, -1e+30 }
 0x307   : > { %v361_v62 = vmax.f32 %v354_v57, %v357_v61 }
 0x309   : > { %v362_v0 = vmax.f32 %v361_v62, %v360_v63 }
 0x30b   : > { %v363_v1 = vsub.f32 %v354_v57, %v362_v0  ;;  %v366_v4 = vsub.f32 %v357_v61, %v362_v0  ;;  %v370_v5 = vsub.f32 %v360_v63, %v362_v0 }
 0x30d   : > { %v364_v6 = vmul.f32 1.442695, %v363_v1  ;;  %v367_v7 = vmul.f32 1.442695, %v366_v4  ;;  %v371_v9 = vmul.f32 1.442695, %v370_v5 }
 0x30f   : > { %602 = vpow2.f32 %v364_v6 }
 0x310   : > { %604 = vpow2.f32 %v367_v7 }
 0x311   : > { %606 = vpow2.f32 %v371_v9 }
 0x316   : > { %v391_v22 = vpop.permute.xlu1 %390 }
 0x317   : > { %vm392_vm11 = vcmp.eq.s32.totalorder %v391_v22, 1 }
 0x319   : > { %v603_v10 = vpop.eup %602 }
 0x31a   : > { %v605_v11 = vpop.eup %604 }
 0x31b   : > { %v369_v13 = vadd.f32 %v605_v11, %v603_v10  ;;  %v607_v14 = vpop.eup %606  ;;  %v496_v10 = vstv %s494_s25  ;;  %v499_v11 = vstv %s498_s26 }
 0x31c   : > { %vm497_vm1 = vcmp.lt.s32.totalorder %v496_v10, %v701_v3  ;;  %vm500_vm2 = vcmp.eq.s32.totalorder %v499_v11, 1 }
 0x31d   : > { %v373_v15 = vadd.f32 %v607_v14, %v369_v13  ;;  %v553_v14 = vld [vmem:[%s685_s22 + $0xc] sm:$0x3]  ;;  %vm501_vm5 = vmand %vm500_vm2, %vm497_vm1 }
 0x31f   : > { %608 = vlog2.f32 %v373_v15 }
 0x329   : > { %v609_v16 = vpop.eup %608 }
 0x32a   : > { %v375_v19 = vmul.f32 0.6931472, %v609_v16 }
 0x32c   : > { %v376_v21 = vadd.f32 %v375_v19, %v362_v0  ;;  %v505_v19 = vsel %vm501_vm5, 1, %v643_v2 }
 0x32e   : > { %v387_v23 = vadd.f32 %v551_v20, %v376_v21 }
 0x330   : > { %v393_v24 = vsel %vm392_vm11, %v387_v23, %v354_v57 }
 0x331   : > { %397 = vrot.lane.b32.xlu1 %v393_v24, %s644_s7  ;;  %394 = vrot.lane.b32.xlu0 %v393_v24, %s642_s29 }
 0x335   : > { %429 = vperm.xlu0 %569, %v427_v25  }
 0x3a3   : > { %v398_v26 = vpop.permute.xlu1 %397  ;;  %v395_v27 = vpop.permute.xlu0 %394 }
 0x3a4   : > { %v396_v28 = vsel %vm193_vm3, %v395_v27, -1e+30  ;;  %v399_v30 = vsel %vm718_vm6, %v398_v26, -1e+30 }
 0x3a5   : > { %v400_v29 = vmax.f32 %v393_v24, %v396_v28 }
 0x3a7   : > { %v401_v31 = vmax.f32 %v400_v29, %v399_v30 }
 0x3a9   : > { %v402_v32 = vsub.f32 %v393_v24, %v401_v31  ;;  %v405_v33 = vsub.f32 %v396_v28, %v401_v31  ;;  %v409_v34 = vsub.f32 %v399_v30, %v401_v31 }
 0x3ab   : > { %v403_v35 = vmul.f32 1.442695, %v402_v32  ;;  %v406_v36 = vmul.f32 1.442695, %v405_v33  ;;  %v410_v37 = vmul.f32 1.442695, %v409_v34 }
 0x3ad   : > { %610 = vpow2.f32 %v403_v35  ;;  %v554_v35 = vld [vmem:[%s685_s22 + $0xe] sm:$0x3] }
 0x3ae   : > { %612 = vpow2.f32 %v406_v36 }
 0x3af   : > { %614 = vpow2.f32 %v410_v37 }
 0x3b4   : > { %v430_v49 = vpop.permute.xlu0 %429 }
 0x3b5   : > { %vm431_vm15 = vcmp.eq.s32.totalorder %v430_v49, 1 }
 0x3b7   : > { %v611_v38 = vpop.eup %610 }
 0x3b8   : > { %v613_v39 = vpop.eup %612 }
 0x3b9   : > { %v408_v40 = vadd.f32 %v613_v39, %v611_v38  ;;  %v615_v41 = vpop.eup %614 }
 0x3bb   : > { %v412_v42 = vadd.f32 %v615_v41, %v408_v40 }
 0x3bd   : > { %616 = vlog2.f32 %v412_v42 }
 0x3c7   : > { %v617_v43 = vpop.eup %616 }
 0x3c8   : > { %v414_v46 = vmul.f32 0.6931472, %v617_v43 }
 0x3ca   : > { %v415_v48 = vadd.f32 %v414_v46, %v401_v31 }
 0x3cc   : > { %v426_v50 = vadd.f32 %v552_v47, %v415_v48 }
 0x3ce   : > { %v432_v51 = vsel %vm431_vm15, %v426_v50, %v393_v24 }
 0x3cf   : > { %436 = vrot.lane.b32.xlu0 %v432_v51, %s644_s7  ;;  %433 = vrot.lane.b32.xlu1 %v432_v51, %s642_s29 }
 0x3d3   : > { %468 = vperm.xlu1 %568, %v466_v52  }
 0x441   : > { %v437_v53 = vpop.permute.xlu0 %436  ;;  %v434_v54 = vpop.permute.xlu1 %433 }
 0x442   : > { %v435_v55 = vsel %vm193_vm3, %v434_v54, -1e+30  ;;  %v438_v57 = vsel %vm718_vm6, %v437_v53, -1e+30 }
 0x443   : > { %v439_v56 = vmax.f32 %v432_v51, %v435_v55 }
 0x445   : > { %v440_v58 = vmax.f32 %v439_v56, %v438_v57 }
 0x447   : > { %v441_v59 = vsub.f32 %v432_v51, %v440_v58  ;;  %v444_v60 = vsub.f32 %v435_v55, %v440_v58  ;;  %v448_v61 = vsub.f32 %v438_v57, %v440_v58 }
 0x449   : > { %v442_v62 = vmul.f32 1.442695, %v441_v59  ;;  %v445_v63 = vmul.f32 1.442695, %v444_v60  ;;  %v449_v0 = vmul.f32 1.442695, %v448_v61 }
 0x44b   : > { %618 = vpow2.f32 %v442_v62 }
 0x44c   : > { %620 = vpow2.f32 %v445_v63 }
 0x44d   : > { %622 = vpow2.f32 %v449_v0 }
 0x452   : > { %v469_v16 = vpop.permute.xlu1 %468 }
 0x453   : > { %vm470_vm4 = vcmp.eq.s32.totalorder %v469_v16, 1 }
 0x455   : > { %v619_v1 = vpop.eup %618 }
 0x456   : > { %v621_v4 = vpop.eup %620 }
 0x457   : > { %v447_v5 = vadd.f32 %v621_v4, %v619_v1  ;;  %v623_v6 = vpop.eup %622 }
 0x459   : > { %v451_v7 = vadd.f32 %v623_v6, %v447_v5 }
 0x45b   : > { %624 = vlog2.f32 %v451_v7 }
 0x465   : > { %v625_v9 = vpop.eup %624 }
 0x466   : > { %v453_v13 = vmul.f32 0.6931472, %v625_v9 }
 0x468   : > { %v454_v15 = vadd.f32 %v453_v13, %v440_v58 }
 0x46a   : > { %v465_v17 = vadd.f32 %v553_v14, %v454_v15 }
 0x46c   : > { %v471_v18 = vsel %vm470_vm4, %v465_v17, %v432_v51 }
 0x46d   : > { %475 = vrot.lane.b32.xlu1 %v471_v18, %s644_s7  ;;  %472 = vrot.lane.b32.xlu0 %v471_v18, %s642_s29 }
 0x471   : > { %507 = vperm.xlu0 %569, %v505_v19  }
 0x4df   : > { %v476_v20 = vpop.permute.xlu1 %475  ;;  %v473_v21 = vpop.permute.xlu0 %472 }
 0x4e0   : > { %v474_v22 = vsel %vm193_vm3, %v473_v21, -1e+30  ;;  %v477_v3 = vsel %vm718_vm6, %v476_v20, -1e+30 }
 0x4e1   : > { %v478_v23 = vmax.f32 %v471_v18, %v474_v22 }
 0x4e3   : > { %v479_v24 = vmax.f32 %v478_v23, %v477_v3 }
 0x4e5   : > { %v480_v25 = vsub.f32 %v471_v18, %v479_v24  ;;  %v483_v26 = vsub.f32 %v474_v22, %v479_v24  ;;  %v487_v27 = vsub.f32 %v477_v3, %v479_v24 }
 0x4e7   : > { %v481_v28 = vmul.f32 1.442695, %v480_v25  ;;  %v484_v29 = vmul.f32 1.442695, %v483_v26  ;;  %v488_v30 = vmul.f32 1.442695, %v487_v27 }
 0x4e9   : > { %626 = vpow2.f32 %v481_v28 }
 0x4ea   : > { %628 = vpow2.f32 %v484_v29 }
 0x4eb   : > { %630 = vpow2.f32 %v488_v30 }
 0x4f0   : > { %v508_v37 = vpop.permute.xlu0 %507 }
 0x4f1   : > { %vm509_vm3 = vcmp.eq.s32.totalorder %v508_v37, 1 }
 0x4f3   : > { %v627_v2 = vpop.eup %626 }
 0x4f4   : > { %v629_v31 = vpop.eup %628 }
 0x4f5   : > { %v486_v32 = vadd.f32 %v629_v31, %v627_v2  ;;  %v631_v8 = vpop.eup %630 }
 0x4f7   : > { %v490_v33 = vadd.f32 %v631_v8, %v486_v32 }
 0x4f9   : > { %632 = vlog2.f32 %v490_v33 }
 0x503   : > { %v633_v34 = vpop.eup %632 }
 0x504   : > { %v492_v12 = vmul.f32 0.6931472, %v633_v34 }
 0x506   : > { %v493_v36 = vadd.f32 %v492_v12, %v479_v24 }
 0x508   : > { %v504_v38 = vadd.f32 %v554_v35, %v493_v36 }
 0x50a   : > { %v510_v39 = vsel %vm509_vm3, %v504_v38, %v471_v18 }
 0x50b   : > { %511 = vst [vmem:[%s805_s4] sm:$0x3] %v510_v39 }
 0x50c PF: > { %s14_s15 = sadd.s32 1, %s640_s15  }
 0x50d   : > { %p11_p13 = scmp.ge.s32.totalorder %s14_s15, 4  }
 0x50f   :  { %13 = sbr.rel (!%p11_p13) target bundleno = 1 (0x1), region = 73 }

</bundles_post_ra>
